<compile_context>
chip_gen: v7x
topology: tpu7x:2x2x1
jax: 0.10.0
libtpu: 0.0.40
codegen_flags: <defaults>
</compile_context>

<pallas_src>
import math

import jax
import jax.numpy as jnp
from jax.experimental import pallas as pl
from jax.experimental.pallas import tpu as pltpu


DEFAULT_BATCH_TILE = 128  # rows (batch elements) per grid step; tunable, multiple of 8


def _round_up(v, m):
    return -(-v // m) * m


# ----------------------------------------------------------------------------
# Deterministic parameter construction (synthetic init, no checkpoint load)
# ----------------------------------------------------------------------------
def _scale_noise(key, n):
    x = jax.random.normal(key, (n,), jnp.float32)
    return jnp.sign(x) * jnp.sqrt(jnp.abs(x))


def _noisy_linear_effective(key, in_f, out_f, std_init=0.4):
    """Training-mode NoisyLinear: weight = mu + sigma * epsilon (same for bias)."""
    k1, k2, k3, k4 = jax.random.split(key, 4)
    mu_range = 1.0 / math.sqrt(in_f)
    w_mu = jax.random.uniform(k1, (out_f, in_f), jnp.float32, -mu_range, mu_range)
    w_sigma = jnp.full((out_f, in_f), std_init / math.sqrt(in_f), jnp.float32)
    b_mu = jax.random.uniform(k2, (out_f,), jnp.float32, -mu_range, mu_range)
    b_sigma = jnp.full((out_f,), std_init / math.sqrt(out_f), jnp.float32)
    eps_in = _scale_noise(k3, in_f)
    eps_out = _scale_noise(k4, out_f)
    return w_mu + w_sigma * jnp.outer(eps_out, eps_in), b_mu + b_sigma * eps_out


def _conv_params(key, cin, cout, k):
    fan_in = cin * k * k
    bound = 1.0 / math.sqrt(fan_in)
    kw_, kb_ = jax.random.split(key)
    w = jax.random.uniform(kw_, (cout, cin, k, k), jnp.float32, -bound, bound)
    b = jax.random.uniform(kb_, (cout,), jnp.float32, -bound, bound)
    return w, b


def init_evolvable_cnn_dqn(key, input_shape, channel_size, kernal_size,
                           stride_size, hidden_size, num_actions, num_atoms):
    keys = jax.random.split(key, 3)
    convs = []
    ckeys = jax.random.split(keys[0], len(channel_size))
    cin, h, w = input_shape
    for ck, cout, k, s in zip(ckeys, channel_size, kernal_size, stride_size):
        convs.append(_conv_params(ck, cin, cout, k))
        h = (h - k) // s + 1
        w = (w - k) // s + 1
        cin = cout
    flat = channel_size[-1] * h * w

    def make_mlp(mkey, in_size, out_size):
        sizes = [in_size] + list(hidden_size) + [out_size]
        lkeys = jax.random.split(mkey, len(sizes) - 1)
        return [_noisy_linear_effective(lk, sizes[i], sizes[i + 1])
                for i, lk in enumerate(lkeys)]

    return {"convs": convs,
            "value": make_mlp(keys[1], flat, num_atoms),
            "adv": make_mlp(keys[2], flat, num_atoms * num_actions),
            "flat": flat}


# ----------------------------------------------------------------------------
# Fused forward-pass builder
# ----------------------------------------------------------------------------
def make_fused_forward(params, input_shape, channel_size, kernal_size,
                       stride_size, hidden_size, num_actions, num_atoms,
                       batch_tile=DEFAULT_BATCH_TILE):
    # ---- static configuration ----------------------------------------------
    # TODO(synk): kernel is specialised to 2 conv layers and 1 hidden MLP layer
    # (the demo config); deeper evolved variants need extra fused GEMM stages.
    assert len(channel_size) == 2 and len(kernal_size) == 2 and len(stride_size) == 2
    assert len(hidden_size) == 1

    C0, H, W = input_shape
    C1, C2 = channel_size
    K1, K2 = kernal_size
    S1, S2 = stride_size
    HO1, WO1 = (H - K1) // S1 + 1, (W - K1) // S1 + 1
    HO2, WO2 = (HO1 - K2) // S2 + 1, (WO1 - K2) // S2 + 1
    IN = C0 * H * W                  # flattened NCHW input width  (demo: 1024)
    N1 = C1 * HO1 * WO1              # conv1 output width, NCHW-flat (demo: 392)
    N2 = C2 * HO2 * WO2              # conv2 output width == FLAT    (demo: 144)
    NA, A = num_actions, num_atoms
    NH = A + NA * A                  # merged head width: [value | advantage]
    HID = hidden_size[0]
    HIDP = _round_up(2 * HID, 128)   # merged hidden width, padded to 128 lanes
    assert params["flat"] == N2

    # Guard: dense-unrolled conv weights must stay comfortably inside VMEM.
    # TODO(synk): large evolved configs (e.g. Atari 84x84) need a
    # tap-accumulation conv path instead of the dense unroll used here.
    assert (IN * N1 + N1 * N2) * 2 <= 8 * 1024 * 1024, \
        "conv unroll too large for the dense-GEMM strategy"

    f32, bf16 = jnp.float32, jnp.bfloat16

    # ---- build dense (im2col-folded) conv matrices at build time -------------
    # Push an identity basis through the exact same lax.conv the reference uses:
    # rows are NCHW-flat input positions, cols are NCHW-flat output positions.
    (w1, b1), (w2, b2) = params["convs"]

    def unroll_conv(w, cin, hin, win, stride):
        eye = jnp.eye(cin * hin * win, dtype=f32).reshape(cin * hin * win, cin, hin, win)
        cols = jax.lax.conv_general_dilated(
            eye, w, window_strides=(stride, stride), padding="VALID",
            dimension_numbers=("NCHW", "OIHW", "NCHW"))
        return cols.reshape(cin * hin * win, -1)

    w1d = unroll_conv(w1, C0, H, W, S1).astype(bf16)        # (IN, N1)
    w2d = unroll_conv(w2, C1, HO1, WO1, S2).astype(bf16)    # (N1, N2)
    b1d = jnp.repeat(b1, HO1 * WO1).reshape(1, N1).astype(f32)
    b2d = jnp.repeat(b2, HO2 * WO2).reshape(1, N2).astype(f32)

    # ---- merged value|advantage MLP weights, lane-padded to HIDP -------------
    (wv1, bv1), (wv2, bv2) = params["value"]   # (HID,FLAT),(HID,)  (A,HID),(A,)
    (wa1, ba1), (wa2, ba2) = params["adv"]     # (HID,FLAT),(HID,)  (NA*A,HID),(NA*A,)

    wh = jnp.zeros((N2, HIDP), f32)
    wh = wh.at[:, 0:HID].set(wv1.T).at[:, HID:2 * HID].set(wa1.T)
    bh = jnp.zeros((1, HIDP), f32)
    bh = bh.at[0, 0:HID].set(bv1).at[0, HID:2 * HID].set(ba1)
    wo = jnp.zeros((HIDP, NH), f32)
    wo = wo.at[0:HID, 0:A].set(wv2.T).at[HID:2 * HID, A:NH].set(wa2.T)
    bo = jnp.concatenate([bv2, ba2]).reshape(1, NH).astype(f32)
    wh = wh.astype(bf16)
    wo = wo.astype(bf16)

    inv255 = 1.0 / 255.0

    # ---- the fused kernel: 4 lane-dense GEMMs + dueling/softmax epilogue -----
    def kernel(x_ref, w1_ref, b1_ref, w2_ref, b2_ref,
               wh_ref, bh_ref, wo_ref, bo_ref, out_ref):
        # conv1 as a GEMM; 1/255 input scale applied on the f32 accumulator.
        a1 = jnp.dot(x_ref[...], w1_ref[...], preferred_element_type=f32)
        a1 = jnp.maximum(a1 * inv255 + b1_ref[...], 0.0)            # (BT, N1)

        # conv2 as a GEMM (im2col folded into w2d at build time).
        a2 = jnp.dot(a1.astype(bf16), w2_ref[...], preferred_element_type=f32)
        a2 = jnp.maximum(a2 + b2_ref[...], 0.0)                     # (BT, N2)

        # merged value|advantage hidden layer (+ReLU), lane-padded to 128.
        hid = jnp.dot(a2.astype(bf16), wh_ref[...], preferred_element_type=f32)
        hid = jnp.maximum(hid + bh_ref[...], 0.0)                   # (BT, HIDP)

        # merged heads + dueling combine + per-atom softmax (fused epilogue).
        heads = jnp.dot(hid.astype(bf16), wo_ref[...], preferred_element_type=f32)
        heads = heads + bo_ref[...]                                 # (BT, A + NA*A)
        value = heads[:, 0:A]
        mean_adv = heads[:, A:2 * A]
        for n in range(1, NA):
            mean_adv = mean_adv + heads[:, A + n * A:A + (n + 1) * A]
        mean_adv = mean_adv * (1.0 / NA)
        for n in range(NA):
            qn = value + heads[:, A + n * A:A + (n + 1) * A] - mean_adv
            qn = qn - jnp.max(qn, axis=-1, keepdims=True)
            e = jnp.exp(qn)
            inv = pl.reciprocal(jnp.sum(e, axis=-1, keepdims=True), approx=True)
            out_ref[:, n * A:(n + 1) * A] = e * inv

    # ---- wrapper: batch tiling + pallas_call ---------------------------------
    def forward(x_nchw):
        B = x_nchw.shape[0]
        Bp8 = _round_up(B, 8)
        bt = min(batch_tile, Bp8)
        if Bp8 >= 16:               # keep >= 2 "parallel" steps so v7x's 2nd TC has work
            bt = min(bt, _round_up(Bp8 // 2, 8))
        bt = max(8, _round_up(bt, 8))
        Bp = _round_up(Bp8, bt)
        nb = Bp // bt

        # Free reshape of the NCHW flatten (no transpose), shipped to VMEM as bf16.
        x_flat = x_nchw.reshape(B, IN).astype(bf16)
        if Bp != B:
            x_flat = jnp.pad(x_flat, ((0, Bp - B), (0, 0)))

        out = pl.pallas_call(
            kernel,
            out_shape=jax.ShapeDtypeStruct((Bp, NA * A), f32),
            grid_spec=pltpu.PrefetchScalarGridSpec(
                num_scalar_prefetch=0,
                grid=(nb,),
                in_specs=[
                    pl.BlockSpec((bt, IN), lambda i: (i, 0)),
                    pl.BlockSpec((IN, N1), lambda i: (0, 0)),
                    pl.BlockSpec((1, N1), lambda i: (0, 0)),
                    pl.BlockSpec((N1, N2), lambda i: (0, 0)),
                    pl.BlockSpec((1, N2), lambda i: (0, 0)),
                    pl.BlockSpec((N2, HIDP), lambda i: (0, 0)),
                    pl.BlockSpec((1, HIDP), lambda i: (0, 0)),
                    pl.BlockSpec((HIDP, NH), lambda i: (0, 0)),
                    pl.BlockSpec((1, NH), lambda i: (0, 0)),
                ],
                out_specs=pl.BlockSpec((bt, NA * A), lambda i: (i, 0)),
            ),
            compiler_params=pltpu.CompilerParams(
                dimension_semantics=("parallel",),
                vmem_limit_bytes=32 * 1024 * 1024),
        )(x_flat, w1d, b1d, w2d, b2d, wh, bh, wo, bo)

        return out[:B].reshape(B, NA, A)

    return forward


# ----------------------------------------------------------------------------
# Pure-JAX (XLA) reference, f32 throughout -- mirrors EvolvableCnnDQN.forward
# ----------------------------------------------------------------------------
def reference_forward(params, x, kernal_size, stride_size, num_actions, num_atoms):
    h = x.astype(jnp.float32) / 255.0
    for (w, b), k, s in zip(params["convs"], kernal_size, stride_size):
        h = jax.lax.conv_general_dilated(
            h, w, window_strides=(s, s), padding="VALID",
            dimension_numbers=("NCHW", "OIHW", "NCHW"))
        h = jnp.maximum(h + b.reshape(1, -1, 1, 1), 0.0)
    feat = h.reshape(x.shape[0], -1)

    def mlp(layers, v):
        for idx, (w, bb) in enumerate(layers):
            v = v @ w.T + bb
            if idx < len(layers) - 1:
                v = jnp.maximum(v, 0.0)
        return v

    value = mlp(params["value"], feat).reshape(-1, 1, num_atoms)
    adv = mlp(params["adv"], feat).reshape(-1, num_actions, num_atoms)
    q = value + adv - jnp.mean(adv, axis=1, keepdims=True)
    return jax.nn.softmax(q, axis=-1)


# ----------------------------------------------------------------------------
# Demo
# ----------------------------------------------------------------------------
if __name__ == "__main__":
    input_shape = [4, 16, 16]
    channel_size = [8, 16]
    kernal_size = [3, 3]
    stride_size = [2, 2]
    hidden_size = [32]
    num_actions = 4
    num_atoms = 8
    batch = 2

    key = jax.random.PRNGKey(0)
    pkey, xkey = jax.random.split(key)
    params = init_evolvable_cnn_dqn(pkey, input_shape, channel_size, kernal_size,
                                    stride_size, hidden_size, num_actions, num_atoms)

    # deterministic "image" input in [0, 255), NCHW
    x = jax.random.uniform(xkey, (batch, *input_shape), jnp.float32, 0.0, 255.0)

    forward = jax.jit(make_fused_forward(
        params, input_shape, channel_size, kernal_size, stride_size,
        hidden_size, num_actions, num_atoms))

    out = jax.block_until_ready(forward(x))

    assert out.shape == (batch, num_actions, num_atoms)
    sums = jnp.sum(out, axis=-1)                      # each atom dist sums to ~1
    assert bool(jnp.all(jnp.abs(sums - 1.0) < 5e-3))  # slack for approx reciprocal

    ref = jax.block_until_ready(
        reference_forward(params, x, kernal_size, stride_size, num_actions, num_atoms))
    # bf16 matmul operands (f32 accumulation) vs. all-f32 reference
    assert bool(jnp.max(jnp.abs(out - ref)) < 3e-2)

    print("KERNEL_OK")
</pallas_src>

<mosaic_0001>
module attributes {stable_mosaic.version = 11 : i64} {
  func.func @kernel(%arg0: i32, %arg1: memref<8x1024xbf16, #tpu.memory_space<vmem>>, %arg2: memref<1024x392xbf16, #tpu.memory_space<vmem>>, %arg3: memref<1x392xf32, #tpu.memory_space<vmem>>, %arg4: memref<392x144xbf16, #tpu.memory_space<vmem>>, %arg5: memref<1x144xf32, #tpu.memory_space<vmem>>, %arg6: memref<144x128xbf16, #tpu.memory_space<vmem>>, %arg7: memref<1x128xf32, #tpu.memory_space<vmem>>, %arg8: memref<128x40xbf16, #tpu.memory_space<vmem>>, %arg9: memref<1x40xf32, #tpu.memory_space<vmem>>, %arg10: memref<8x32xf32, #tpu.memory_space<vmem>>) attributes {dimension_semantics = [#tpu.dimension_semantics<parallel>], iteration_bounds = array<i64: 1>, scalar_prefetch = 0 : i64, scratch_operands = 0 : i64, tpu.core_type = #tpu.core_type<tc>, window_params = [{transform_indices = @transform_0, window_bounds = array<i64: 8, 1024>}, {pipeline_mode = #tpu.pipeline_mode<synchronous>, transform_indices = @transform_1, window_bounds = array<i64: 1024, 392>}, {pipeline_mode = #tpu.pipeline_mode<synchronous>, transform_indices = @transform_2, window_bounds = array<i64: 1, 392>}, {pipeline_mode = #tpu.pipeline_mode<synchronous>, transform_indices = @transform_3, window_bounds = array<i64: 392, 144>}, {pipeline_mode = #tpu.pipeline_mode<synchronous>, transform_indices = @transform_4, window_bounds = array<i64: 1, 144>}, {pipeline_mode = #tpu.pipeline_mode<synchronous>, transform_indices = @transform_5, window_bounds = array<i64: 144, 128>}, {pipeline_mode = #tpu.pipeline_mode<synchronous>, transform_indices = @transform_6, window_bounds = array<i64: 1, 128>}, {pipeline_mode = #tpu.pipeline_mode<synchronous>, transform_indices = @transform_7, window_bounds = array<i64: 128, 40>}, {pipeline_mode = #tpu.pipeline_mode<synchronous>, transform_indices = @transform_8, window_bounds = array<i64: 1, 40>}, {transform_indices = @transform_9, window_bounds = array<i64: 8, 32>}]} {
    %c0 = arith.constant 0 : index
    %c0_0 = arith.constant 0 : index
    %0 = vector.load %arg1[%c0, %c0_0] : memref<8x1024xbf16, #tpu.memory_space<vmem>>, vector<8x1024xbf16>
    %c0_1 = arith.constant 0 : index
    %c0_2 = arith.constant 0 : index
    %1 = vector.load %arg2[%c0_1, %c0_2] : memref<1024x392xbf16, #tpu.memory_space<vmem>>, vector<1024x392xbf16>
    %cst = arith.constant dense<0.000000e+00> : vector<8x392xf32>
    %2 = tpu.matmul %0, %1, %cst {dimension_numbers = #tpu.dot_dimension_numbers<[1], [0], [0], [1], [0, 0, 1, 1], [], []>} : vector<8x1024xbf16>, vector<1024x392xbf16>, vector<8x392xf32> -> vector<8x392xf32>
    %cst_3 = arith.constant 0.00392156886 : f32
    %3 = vector.broadcast %cst_3 : f32 to vector<8x392xf32>
    %4 = arith.mulf %2, %3 : vector<8x392xf32>
    %c0_4 = arith.constant 0 : index
    %c0_5 = arith.constant 0 : index
    %5 = vector.load %arg3[%c0_4, %c0_5] : memref<1x392xf32, #tpu.memory_space<vmem>>, vector<1x392xf32>
    %6 = vector.broadcast %5 : vector<1x392xf32> to vector<8x392xf32>
    %7 = arith.addf %4, %6 : vector<8x392xf32>
    %cst_6 = arith.constant 0.000000e+00 : f32
    %8 = vector.broadcast %cst_6 : f32 to vector<8x392xf32>
    %9 = arith.maximumf %7, %8 : vector<8x392xf32>
    %10 = arith.truncf %9 : vector<8x392xf32> to vector<8x392xbf16>
    %c0_7 = arith.constant 0 : index
    %c0_8 = arith.constant 0 : index
    %11 = vector.load %arg4[%c0_7, %c0_8] : memref<392x144xbf16, #tpu.memory_space<vmem>>, vector<392x144xbf16>
    %cst_9 = arith.constant dense<0.000000e+00> : vector<8x144xf32>
    %12 = tpu.matmul %10, %11, %cst_9 {dimension_numbers = #tpu.dot_dimension_numbers<[1], [0], [0], [1], [0, 0, 1, 1], [], []>} : vector<8x392xbf16>, vector<392x144xbf16>, vector<8x144xf32> -> vector<8x144xf32>
    %c0_10 = arith.constant 0 : index
    %c0_11 = arith.constant 0 : index
    %13 = vector.load %arg5[%c0_10, %c0_11] : memref<1x144xf32, #tpu.memory_space<vmem>>, vector<1x144xf32>
    %14 = vector.broadcast %13 : vector<1x144xf32> to vector<8x144xf32>
    %15 = arith.addf %12, %14 : vector<8x144xf32>
    %cst_12 = arith.constant 0.000000e+00 : f32
    %16 = vector.broadcast %cst_12 : f32 to vector<8x144xf32>
    %17 = arith.maximumf %15, %16 : vector<8x144xf32>
    %18 = arith.truncf %17 : vector<8x144xf32> to vector<8x144xbf16>
    %c0_13 = arith.constant 0 : index
    %c0_14 = arith.constant 0 : index
    %19 = vector.load %arg6[%c0_13, %c0_14] : memref<144x128xbf16, #tpu.memory_space<vmem>>, vector<144x128xbf16>
    %cst_15 = arith.constant dense<0.000000e+00> : vector<8x128xf32>
    %20 = tpu.matmul %18, %19, %cst_15 {dimension_numbers = #tpu.dot_dimension_numbers<[1], [0], [0], [1], [0, 0, 1, 1], [], []>} : vector<8x144xbf16>, vector<144x128xbf16>, vector<8x128xf32> -> vector<8x128xf32>
    %c0_16 = arith.constant 0 : index
    %c0_17 = arith.constant 0 : index
    %21 = vector.load %arg7[%c0_16, %c0_17] : memref<1x128xf32, #tpu.memory_space<vmem>>, vector<1x128xf32>
    %22 = vector.broadcast %21 : vector<1x128xf32> to vector<8x128xf32>
    %23 = arith.addf %20, %22 : vector<8x128xf32>
    %cst_18 = arith.constant 0.000000e+00 : f32
    %24 = vector.broadcast %cst_18 : f32 to vector<8x128xf32>
    %25 = arith.maximumf %23, %24 : vector<8x128xf32>
    %26 = arith.truncf %25 : vector<8x128xf32> to vector<8x128xbf16>
    %c0_19 = arith.constant 0 : index
    %c0_20 = arith.constant 0 : index
    %27 = vector.load %arg8[%c0_19, %c0_20] : memref<128x40xbf16, #tpu.memory_space<vmem>>, vector<128x40xbf16>
    %cst_21 = arith.constant dense<0.000000e+00> : vector<8x40xf32>
    %28 = tpu.matmul %26, %27, %cst_21 {dimension_numbers = #tpu.dot_dimension_numbers<[1], [0], [0], [1], [0, 0, 1, 1], [], []>} : vector<8x128xbf16>, vector<128x40xbf16>, vector<8x40xf32> -> vector<8x40xf32>
    %c0_22 = arith.constant 0 : index
    %c0_23 = arith.constant 0 : index
    %29 = vector.load %arg9[%c0_22, %c0_23] : memref<1x40xf32, #tpu.memory_space<vmem>>, vector<1x40xf32>
    %30 = vector.broadcast %29 : vector<1x40xf32> to vector<8x40xf32>
    %31 = arith.addf %28, %30 : vector<8x40xf32>
    %32 = vector.extract_strided_slice %31 {offsets = [0, 0], sizes = [8, 8], strides = [1, 1]} : vector<8x40xf32> to vector<8x8xf32>
    %33 = vector.extract_strided_slice %31 {offsets = [0, 8], sizes = [8, 8], strides = [1, 1]} : vector<8x40xf32> to vector<8x8xf32>
    %34 = vector.extract_strided_slice %31 {offsets = [0, 16], sizes = [8, 8], strides = [1, 1]} : vector<8x40xf32> to vector<8x8xf32>
    %35 = arith.addf %33, %34 : vector<8x8xf32>
    %36 = vector.extract_strided_slice %31 {offsets = [0, 24], sizes = [8, 8], strides = [1, 1]} : vector<8x40xf32> to vector<8x8xf32>
    %37 = arith.addf %35, %36 : vector<8x8xf32>
    %38 = vector.extract_strided_slice %31 {offsets = [0, 32], sizes = [8, 8], strides = [1, 1]} : vector<8x40xf32> to vector<8x8xf32>
    %39 = arith.addf %37, %38 : vector<8x8xf32>
    %cst_24 = arith.constant 2.500000e-01 : f32
    %40 = vector.broadcast %cst_24 : f32 to vector<8x8xf32>
    %41 = arith.mulf %39, %40 : vector<8x8xf32>
    %42 = vector.extract_strided_slice %31 {offsets = [0, 8], sizes = [8, 8], strides = [1, 1]} : vector<8x40xf32> to vector<8x8xf32>
    %43 = arith.addf %32, %42 : vector<8x8xf32>
    %44 = arith.subf %43, %41 : vector<8x8xf32>
    %cst_25 = arith.constant dense<0xFF800000> : vector<8xf32>
    %45 = vector.multi_reduction <maximumf>, %44, %cst_25 [1] : vector<8x8xf32> to vector<8xf32>
    %46 = vector.shape_cast %45 : vector<8xf32> to vector<8x1xf32>
    %47 = vector.broadcast %46 : vector<8x1xf32> to vector<8x8xf32>
    %48 = arith.subf %44, %47 : vector<8x8xf32>
    %49 = math.exp %48 : vector<8x8xf32>
    %cst_26 = arith.constant dense<0.000000e+00> : vector<8xf32>
    %50 = vector.multi_reduction <add>, %49, %cst_26 [1] : vector<8x8xf32> to vector<8xf32>
    %51 = vector.shape_cast %50 : vector<8xf32> to vector<8x1xf32>
    %52 = tpu.reciprocal %51 {approx = true} : vector<8x1xf32> -> vector<8x1xf32>
    %53 = vector.broadcast %52 : vector<8x1xf32> to vector<8x8xf32>
    %54 = arith.mulf %49, %53 : vector<8x8xf32>
    %c0_27 = arith.constant 0 : index
    %c0_28 = arith.constant 0 : index
    %55 = vector.load %arg10[%c0_27, %c0_28] : memref<8x32xf32, #tpu.memory_space<vmem>>, vector<8x8xf32>
    tpu.vector_store %arg10[%c0_27, %c0_28], %54 {strides = array<i32>} : memref<8x32xf32, #tpu.memory_space<vmem>>, vector<8x8xf32>,
    %56 = vector.extract_strided_slice %31 {offsets = [0, 16], sizes = [8, 8], strides = [1, 1]} : vector<8x40xf32> to vector<8x8xf32>
    %57 = arith.addf %32, %56 : vector<8x8xf32>
    %58 = arith.subf %57, %41 : vector<8x8xf32>
    %cst_29 = arith.constant dense<0xFF800000> : vector<8xf32>
    %59 = vector.multi_reduction <maximumf>, %58, %cst_29 [1] : vector<8x8xf32> to vector<8xf32>
    %60 = vector.shape_cast %59 : vector<8xf32> to vector<8x1xf32>
    %61 = vector.broadcast %60 : vector<8x1xf32> to vector<8x8xf32>
    %62 = arith.subf %58, %61 : vector<8x8xf32>
    %63 = math.exp %62 : vector<8x8xf32>
    %cst_30 = arith.constant dense<0.000000e+00> : vector<8xf32>
    %64 = vector.multi_reduction <add>, %63, %cst_30 [1] : vector<8x8xf32> to vector<8xf32>
    %65 = vector.shape_cast %64 : vector<8xf32> to vector<8x1xf32>
    %66 = tpu.reciprocal %65 {approx = true} : vector<8x1xf32> -> vector<8x1xf32>
    %67 = vector.broadcast %66 : vector<8x1xf32> to vector<8x8xf32>
    %68 = arith.mulf %63, %67 : vector<8x8xf32>
    %c0_31 = arith.constant 0 : index
    %c8 = arith.constant 8 : index
    %69 = vector.load %arg10[%c0_31, %c8] : memref<8x32xf32, #tpu.memory_space<vmem>>, vector<8x8xf32>
    tpu.vector_store %arg10[%c0_31, %c8], %68 {strides = array<i32>} : memref<8x32xf32, #tpu.memory_space<vmem>>, vector<8x8xf32>,
    %70 = vector.extract_strided_slice %31 {offsets = [0, 24], sizes = [8, 8], strides = [1, 1]} : vector<8x40xf32> to vector<8x8xf32>
    %71 = arith.addf %32, %70 : vector<8x8xf32>
    %72 = arith.subf %71, %41 : vector<8x8xf32>
    %cst_32 = arith.constant dense<0xFF800000> : vector<8xf32>
    %73 = vector.multi_reduction <maximumf>, %72, %cst_32 [1] : vector<8x8xf32> to vector<8xf32>
    %74 = vector.shape_cast %73 : vector<8xf32> to vector<8x1xf32>
    %75 = vector.broadcast %74 : vector<8x1xf32> to vector<8x8xf32>
    %76 = arith.subf %72, %75 : vector<8x8xf32>
    %77 = math.exp %76 : vector<8x8xf32>
    %cst_33 = arith.constant dense<0.000000e+00> : vector<8xf32>
    %78 = vector.multi_reduction <add>, %77, %cst_33 [1] : vector<8x8xf32> to vector<8xf32>
    %79 = vector.shape_cast %78 : vector<8xf32> to vector<8x1xf32>
    %80 = tpu.reciprocal %79 {approx = true} : vector<8x1xf32> -> vector<8x1xf32>
    %81 = vector.broadcast %80 : vector<8x1xf32> to vector<8x8xf32>
    %82 = arith.mulf %77, %81 : vector<8x8xf32>
    %c0_34 = arith.constant 0 : index
    %c16 = arith.constant 16 : index
    %83 = vector.load %arg10[%c0_34, %c16] : memref<8x32xf32, #tpu.memory_space<vmem>>, vector<8x8xf32>
    tpu.vector_store %arg10[%c0_34, %c16], %82 {strides = array<i32>} : memref<8x32xf32, #tpu.memory_space<vmem>>, vector<8x8xf32>,
    %84 = vector.extract_strided_slice %31 {offsets = [0, 32], sizes = [8, 8], strides = [1, 1]} : vector<8x40xf32> to vector<8x8xf32>
    %85 = arith.addf %32, %84 : vector<8x8xf32>
    %86 = arith.subf %85, %41 : vector<8x8xf32>
    %cst_35 = arith.constant dense<0xFF800000> : vector<8xf32>
    %87 = vector.multi_reduction <maximumf>, %86, %cst_35 [1] : vector<8x8xf32> to vector<8xf32>
    %88 = vector.shape_cast %87 : vector<8xf32> to vector<8x1xf32>
    %89 = vector.broadcast %88 : vector<8x1xf32> to vector<8x8xf32>
    %90 = arith.subf %86, %89 : vector<8x8xf32>
    %91 = math.exp %90 : vector<8x8xf32>
    %cst_36 = arith.constant dense<0.000000e+00> : vector<8xf32>
    %92 = vector.multi_reduction <add>, %91, %cst_36 [1] : vector<8x8xf32> to vector<8xf32>
    %93 = vector.shape_cast %92 : vector<8xf32> to vector<8x1xf32>
    %94 = tpu.reciprocal %93 {approx = true} : vector<8x1xf32> -> vector<8x1xf32>
    %95 = vector.broadcast %94 : vector<8x1xf32> to vector<8x8xf32>
    %96 = arith.mulf %91, %95 : vector<8x8xf32>
    %c0_37 = arith.constant 0 : index
    %c24 = arith.constant 24 : index
    %97 = vector.load %arg10[%c0_37, %c24] : memref<8x32xf32, #tpu.memory_space<vmem>>, vector<8x8xf32>
    tpu.vector_store %arg10[%c0_37, %c24], %96 {strides = array<i32>} : memref<8x32xf32, #tpu.memory_space<vmem>>, vector<8x8xf32>,
    return
  }
  func.func @transform_0(%arg0: i32) -> (i32, i32) {
    %c0_i32 = arith.constant 0 : i32
    %c0_i32_0 = arith.constant 0 : i32
    return %arg0, %c0_i32 : i32, i32
  }
  func.func @transform_1(%arg0: i32) -> (i32, i32) {
    %c0_i32 = arith.constant 0 : i32
    %c0_i32_0 = arith.constant 0 : i32
    %c0_i32_1 = arith.constant 0 : i32
    return %c0_i32, %c0_i32_0 : i32, i32
  }
  func.func @transform_2(%arg0: i32) -> (i32, i32) {
    %c0_i32 = arith.constant 0 : i32
    %c0_i32_0 = arith.constant 0 : i32
    %c0_i32_1 = arith.constant 0 : i32
    return %c0_i32, %c0_i32_0 : i32, i32
  }
  func.func @transform_3(%arg0: i32) -> (i32, i32) {
    %c0_i32 = arith.constant 0 : i32
    %c0_i32_0 = arith.constant 0 : i32
    %c0_i32_1 = arith.constant 0 : i32
    return %c0_i32, %c0_i32_0 : i32, i32
  }
  func.func @transform_4(%arg0: i32) -> (i32, i32) {
    %c0_i32 = arith.constant 0 : i32
    %c0_i32_0 = arith.constant 0 : i32
    %c0_i32_1 = arith.constant 0 : i32
    return %c0_i32, %c0_i32_0 : i32, i32
  }
  func.func @transform_5(%arg0: i32) -> (i32, i32) {
    %c0_i32 = arith.constant 0 : i32
    %c0_i32_0 = arith.constant 0 : i32
    %c0_i32_1 = arith.constant 0 : i32
    return %c0_i32, %c0_i32_0 : i32, i32
  }
  func.func @transform_6(%arg0: i32) -> (i32, i32) {
    %c0_i32 = arith.constant 0 : i32
    %c0_i32_0 = arith.constant 0 : i32
    %c0_i32_1 = arith.constant 0 : i32
    return %c0_i32, %c0_i32_0 : i32, i32
  }
  func.func @transform_7(%arg0: i32) -> (i32, i32) {
    %c0_i32 = arith.constant 0 : i32
    %c0_i32_0 = arith.constant 0 : i32
    %c0_i32_1 = arith.constant 0 : i32
    return %c0_i32, %c0_i32_0 : i32, i32
  }
  func.func @transform_8(%arg0: i32) -> (i32, i32) {
    %c0_i32 = arith.constant 0 : i32
    %c0_i32_0 = arith.constant 0 : i32
    %c0_i32_1 = arith.constant 0 : i32
    return %c0_i32, %c0_i32_0 : i32, i32
  }
  func.func @transform_9(%arg0: i32) -> (i32, i32) {
    %c0_i32 = arith.constant 0 : i32
    %c0_i32_0 = arith.constant 0 : i32
    return %arg0, %c0_i32 : i32, i32
  }
}

</mosaic_0001>

<bundles_post_ra>
// kernel: forward.1
= control target key start
LH: loop header
LB: loop body
LE: loop exit
PB: predicated region body
PF: predicated region fallthrough
CT: control target
= control target key end

     0   :  { %vm2273_vm0 = vcmask 64512   ;;  %vm2277_vm1 = vcmask 1043456   ;;  %vm2449_vm2 = vcmask 130048   ;;  %vm3607_vm3 = vmmov 0   ;;  %s3611_s16 = smov 96   ;;  %s3613_s17 = smov 16   ;;  %s4718_s1 = inlined_call_operand.vmem [shape: bf16[1024,392], index: 1, kind: input, shape index: {}]   ;;  %s4719_s0 = inlined_call_operand.vmem [shape: bf16[8,1024], index: 0, kind: input, shape index: {}]   ;;  %s4720_s3 = inlined_call_operand.vmem [shape: bf16[392,144], index: 3, kind: input, shape index: {}]   ;;  %s4721_s5 = inlined_call_operand.vmem [shape: bf16[144,128], index: 5, kind: input, shape index: {}]   ;;  %s4722_s2 = inlined_call_operand.vmem [shape: f32[1,392], index: 2, kind: input, shape index: {}]   ;;  %s4723_s7 = inlined_call_operand.vmem [shape: bf16[128,40], index: 7, kind: input, shape index: {}]   ;;  %s4724_s4 = inlined_call_operand.vmem [shape: f32[1,144], index: 4, kind: input, shape index: {}]   ;;  %s4725_s6 = inlined_call_operand.vmem [shape: f32[1,128], index: 6, kind: input, shape index: {}]   ;;  %s4726_s8 = inlined_call_operand.vmem [shape: f32[1,40], index: 8, kind: input, shape index: {}]   ;;  %s4727_s9 = inlined_call_operand.vmem [shape: f32[8,32], index: 9, kind: output, shape index: {}]  }
   0x1   :  { %v3106_v0 = vld [vmem:[%s4718_s1 + $0x4] ss:$16 sps:$4 sm:$0xff]   ;;  %v3108_v1 = vld [vmem:[%s4718_s1 + $0xc] ss:$16 sps:$4 sm:$0xff]   ;;  %v3110_v2 = vld [vmem:[%s4718_s1] ss:$16 sps:$4 sm:$0xff]  }
   0x2   :  { %1601 = vmatprep.subr.bf16.mxu0 %v3106_v0  ;;  %v3111_v3 = vld [vmem:[%s4718_s1 + $0x8] ss:$16 sps:$4 sm:$0xff]   ;;  %1765 = vmatprep.subr.bf16.mxu1 %v3108_v1  ;;  %v3112_v4 = vld [vmem:[%s4718_s1 + $0x24] ss:$16 sps:$4 sm:$0xff]   ;;  %v3114_v5 = vld [vmem:[%s4718_s1 + $0x2c] ss:$16 sps:$4 sm:$0xff]  }
   0x3   :  { %1602 = vmatpush1.bf16.msra.mxu0 %v3110_v2  ;;  %1766 = vmatpush1.bf16.msra.mxu1 %v3111_v3  ;;  %v3116_v6 = vld [vmem:[%s4718_s1 + $0x20] ss:$16 sps:$4 sm:$0xff]   ;;  %v3117_v7 = vld [vmem:[%s4718_s1 + $0x28] ss:$16 sps:$4 sm:$0xff]   ;;  %v3118_v8 = vld [vmem:[%s4718_s1 + $0x44] ss:$16 sps:$4 sm:$0xff]  }
   0x4   :  { %1603 = vmatprep.subr.bf16.mxu0 %v3112_v4  ;;  %1767 = vmatprep.subr.bf16.mxu1 %v3114_v5  ;;  %v3120_v9 = vld [vmem:[%s4718_s1 + $0x4c] ss:$16 sps:$4 sm:$0xff]   ;;  %v3122_v10 = vld [vmem:[%s4718_s1 + $0x40] ss:$16 sps:$4 sm:$0xff]   ;;  %v3123_v11 = vld [vmem:[%s4718_s1 + $0x48] ss:$16 sps:$4 sm:$0xff]  }
   0x5   :  { %v3124_v12 = vld [vmem:[%s4718_s1 + $0x64] ss:$16 sps:$4 sm:$0xff]   ;;  %v3126_v13 = vld [vmem:[%s4718_s1 + $0x6c] ss:$16 sps:$4 sm:$0xff]   ;;  %v3128_v14 = vld [vmem:[%s4718_s1 + $0x60] ss:$16 sps:$4 sm:$0xff]  }
   0x6   :  { %v3129_v15 = vld [vmem:[%s4718_s1 + $0x68] ss:$16 sps:$4 sm:$0xff]   ;;  %v3130_v16 = vld [vmem:[%s4718_s1 + $0x84] ss:$16 sps:$4 sm:$0xff]   ;;  %v3132_v17 = vld [vmem:[%s4718_s1 + $0x8c] ss:$16 sps:$4 sm:$0xff]  }
   0x7   :  { %1604 = vmatpush1.bf16.msra.mxu0 %v3116_v6  ;;  %1768 = vmatpush1.bf16.msra.mxu1 %v3117_v7  ;;  %v3134_v18 = vld [vmem:[%s4718_s1 + $0x80] ss:$16 sps:$4 sm:$0xff]   ;;  %v3135_v19 = vld [vmem:[%s4718_s1 + $0x88] ss:$16 sps:$4 sm:$0xff]   ;;  %v3136_v20 = vld [vmem:[%s4718_s1 + $0xa4] ss:$16 sps:$4 sm:$0xff]  }
   0x8   :  { %1605 = vmatprep.subr.bf16.mxu0 %v3118_v8  ;;  %1769 = vmatprep.subr.bf16.mxu1 %v3120_v9  ;;  %v3138_v21 = vld [vmem:[%s4718_s1 + $0xac] ss:$16 sps:$4 sm:$0xff]   ;;  %v3140_v22 = vld [vmem:[%s4718_s1 + $0xa0] ss:$16 sps:$4 sm:$0xff]   ;;  %v3141_v23 = vld [vmem:[%s4718_s1 + $0xa8] ss:$16 sps:$4 sm:$0xff]  }
   0x9   :  { %v3142_v24 = vld [vmem:[%s4718_s1 + $0xc4] ss:$16 sps:$4 sm:$0xff]   ;;  %v3144_v25 = vld [vmem:[%s4718_s1 + $0xcc] ss:$16 sps:$4 sm:$0xff]   ;;  %v3146_v26 = vld [vmem:[%s4718_s1 + $0xc0] ss:$16 sps:$4 sm:$0xff]  }
   0xa   :  { %v3147_v27 = vld [vmem:[%s4718_s1 + $0xc8] ss:$16 sps:$4 sm:$0xff]   ;;  %v3148_v28 = vld [vmem:[%s4718_s1 + $0xe4] ss:$16 sps:$4 sm:$0xff]   ;;  %v3150_v29 = vld [vmem:[%s4718_s1 + $0xec] ss:$16 sps:$4 sm:$0xff]  }
   0xb   :  { %1606 = vmatpush1.bf16.msra.mxu0 %v3122_v10  ;;  %1770 = vmatpush1.bf16.msra.mxu1 %v3123_v11  ;;  %v3152_v30 = vld [vmem:[%s4718_s1 + $0xe0] ss:$16 sps:$4 sm:$0xff]   ;;  %v3153_v31 = vld [vmem:[%s4718_s1 + $0xe8] ss:$16 sps:$4 sm:$0xff]   ;;  %v3154_v32 = vld [vmem:[%s4718_s1 + $0x104] ss:$16 sps:$4 sm:$0xff]  }
   0xc   :  { %1607 = vmatprep.subr.bf16.mxu0 %v3124_v12  ;;  %1771 = vmatprep.subr.bf16.mxu1 %v3126_v13  ;;  %v3156_v33 = vld [vmem:[%s4718_s1 + $0x10c] ss:$16 sps:$4 sm:$0xff]   ;;  %v3158_v34 = vld [vmem:[%s4718_s1 + $0x100] ss:$16 sps:$4 sm:$0xff]   ;;  %v3159_v35 = vld [vmem:[%s4718_s1 + $0x108] ss:$16 sps:$4 sm:$0xff]  }
   0xd   :  { %v3160_v36 = vld [vmem:[%s4718_s1 + $0x124] ss:$16 sps:$4 sm:$0xff]   ;;  %v3162_v37 = vld [vmem:[%s4718_s1 + $0x12c] ss:$16 sps:$4 sm:$0xff]   ;;  %v3164_v38 = vld [vmem:[%s4718_s1 + $0x120] ss:$16 sps:$4 sm:$0xff]  }
   0xe   :  { %v3165_v39 = vld [vmem:[%s4718_s1 + $0x128] ss:$16 sps:$4 sm:$0xff]   ;;  %v3166_v40 = vld [vmem:[%s4718_s1 + $0x144] ss:$16 sps:$4 sm:$0xff]   ;;  %v3168_v41 = vld [vmem:[%s4718_s1 + $0x14c] ss:$16 sps:$4 sm:$0xff]  }
   0xf   :  { %1608 = vmatpush1.bf16.msra.mxu0 %v3128_v14  ;;  %1772 = vmatpush1.bf16.msra.mxu1 %v3129_v15  ;;  %v3170_v42 = vld [vmem:[%s4718_s1 + $0x140] ss:$16 sps:$4 sm:$0xff]   ;;  %v3171_v43 = vld [vmem:[%s4718_s1 + $0x148] ss:$16 sps:$4 sm:$0xff]   ;;  %v3172_v44 = vld [vmem:[%s4718_s1 + $0x164] ss:$16 sps:$4 sm:$0xff]  }
  0x10   :  { %1609 = vmatprep.subr.bf16.mxu0 %v3130_v16  ;;  %1773 = vmatprep.subr.bf16.mxu1 %v3132_v17  ;;  %v3174_v45 = vld [vmem:[%s4718_s1 + $0x16c] ss:$16 sps:$4 sm:$0xff]   ;;  %v33_v46 = vld [vmem:[%s4719_s0] sm:$0xff]  ;;  %v3177_v49 = vld [vmem:[%s4718_s1 + $0x168] ss:$16 sps:$4 sm:$0xff]   ;;  %s3614_s19 = smov 24  }
  0x11   :  { %v3176_v47 = vld [vmem:[%s4718_s1 + $0x160] ss:$16 sps:$4 sm:$0xff]   ;;  %v2702_v48 = vcombine.high %v33_v46, %v33_v46  ;;  %v3178_v50 = vld [vmem:[%s4718_s1 + $0x184] ss:$16 sps:$4 sm:$0xff]   ;;  %v3180_v51 = vld [vmem:[%s4718_s1 + $0x18c] ss:$16 sps:$4 sm:$0xff]   ;;  %v2701_v4 = vcombine.low %v33_v46, %v33_v46 }
  0x12   :  { %v3182_v52 = vld [vmem:[%s4718_s1 + $0x180] ss:$16 sps:$4 sm:$0xff]   ;;  %v3183_v53 = vld [vmem:[%s4718_s1 + $0x188] ss:$16 sps:$4 sm:$0xff]   ;;  %v3184_v54 = vld [vmem:[%s4718_s1 + $0x1a4] ss:$16 sps:$4 sm:$0xff]  }
  0x13   :  { %1610 = vmatpush1.bf16.msra.mxu0 %v3134_v18  ;;  %1774 = vmatpush1.bf16.msra.mxu1 %v3135_v19  ;;  %v3186_v55 = vld [vmem:[%s4718_s1 + $0x1ac] ss:$16 sps:$4 sm:$0xff]   ;;  %v3188_v56 = vld [vmem:[%s4718_s1 + $0x1a0] ss:$16 sps:$4 sm:$0xff]   ;;  %v3189_v57 = vld [vmem:[%s4718_s1 + $0x1a8] ss:$16 sps:$4 sm:$0xff]  }
  0x14   :  { %1611 = vmatprep.subr.bf16.mxu0 %v3136_v20  ;;  %1775 = vmatprep.subr.bf16.mxu1 %v3138_v21  ;;  %v3190_v58 = vld [vmem:[%s4718_s1 + $0x1c4] ss:$16 sps:$4 sm:$0xff]   ;;  %v3192_v59 = vld [vmem:[%s4718_s1 + $0x1cc] ss:$16 sps:$4 sm:$0xff]   ;;  %v3194_v60 = vld [vmem:[%s4718_s1 + $0x1c0] ss:$16 sps:$4 sm:$0xff]  }
  0x15   :  { %1633 = vmatprep.mubr.bf16.mxu0 %v2702_v48  ;;  %1797 = vmatprep.mubr.bf16.mxu1 %v2702_v48  ;;  %v3195_v61 = vld [vmem:[%s4718_s1 + $0x1c8] ss:$16 sps:$4 sm:$0xff]   ;;  %v3196_v62 = vld [vmem:[%s4718_s1 + $0x1e4] ss:$16 sps:$4 sm:$0xff]   ;;  %v3198_v63 = vld [vmem:[%s4718_s1 + $0x1ec] ss:$16 sps:$4 sm:$0xff]  }
  0x16   :  { %v3200_v0 = vld [vmem:[%s4718_s1 + $0x1e0] ss:$16 sps:$4 sm:$0xff]   ;;  %v3201_v1 = vld [vmem:[%s4718_s1 + $0x1e8] ss:$16 sps:$4 sm:$0xff]   ;;  %v3206_v2 = vld [vmem:[%s4718_s1 + $0x204] ss:$16 sps:$4 sm:$0xff]  }
  0x17   :  { %1612 = vmatpush1.bf16.msra.mxu0 %v3140_v22  ;;  %1776 = vmatpush1.bf16.msra.mxu1 %v3141_v23  ;;  %v3209_v3 = vld [vmem:[%s4718_s1 + $0x20c] ss:$16 sps:$4 sm:$0xff]   ;;  %v3204_v5 = vld [vmem:[%s4718_s1 + $0x200] ss:$16 sps:$4 sm:$0xff]   ;;  %v3207_v6 = vld [vmem:[%s4718_s1 + $0x208] ss:$16 sps:$4 sm:$0xff]  }
  0x18   :  { %1613 = vmatprep.subr.bf16.mxu0 %v3142_v24  ;;  %1777 = vmatprep.subr.bf16.mxu1 %v3144_v25  ;;  %v3212_v7 = vld [vmem:[%s4718_s1 + $0x224] ss:$16 sps:$4 sm:$0xff]   ;;  %v3215_v8 = vld [vmem:[%s4718_s1 + $0x22c] ss:$16 sps:$4 sm:$0xff]   ;;  %v3210_v9 = vld [vmem:[%s4718_s1 + $0x220] ss:$16 sps:$4 sm:$0xff]  }
  0x19   :  { %v3213_v10 = vld [vmem:[%s4718_s1 + $0x228] ss:$16 sps:$4 sm:$0xff]   ;;  %v3218_v11 = vld [vmem:[%s4718_s1 + $0x244] ss:$16 sps:$4 sm:$0xff]   ;;  %v3221_v12 = vld [vmem:[%s4718_s1 + $0x24c] ss:$16 sps:$4 sm:$0xff]  }
  0x1a   :  { %v3216_v13 = vld [vmem:[%s4718_s1 + $0x240] ss:$16 sps:$4 sm:$0xff]   ;;  %v3219_v14 = vld [vmem:[%s4718_s1 + $0x248] ss:$16 sps:$4 sm:$0xff]   ;;  %v3224_v15 = vld [vmem:[%s4718_s1 + $0x264] ss:$16 sps:$4 sm:$0xff]  }
  0x1b   :  { %1614 = vmatpush1.bf16.msra.mxu0 %v3146_v26  ;;  %1778 = vmatpush1.bf16.msra.mxu1 %v3147_v27  ;;  %v3227_v16 = vld [vmem:[%s4718_s1 + $0x26c] ss:$16 sps:$4 sm:$0xff]   ;;  %v3222_v17 = vld [vmem:[%s4718_s1 + $0x260] ss:$16 sps:$4 sm:$0xff]   ;;  %v3225_v18 = vld [vmem:[%s4718_s1 + $0x268] ss:$16 sps:$4 sm:$0xff]  }
  0x1c   :  { %1615 = vmatprep.subr.bf16.mxu0 %v3148_v28  ;;  %1779 = vmatprep.subr.bf16.mxu1 %v3150_v29  ;;  %v3230_v19 = vld [vmem:[%s4718_s1 + $0x284] ss:$16 sps:$4 sm:$0xff]   ;;  %v3233_v20 = vld [vmem:[%s4718_s1 + $0x28c] ss:$16 sps:$4 sm:$0xff]   ;;  %v3228_v21 = vld [vmem:[%s4718_s1 + $0x280] ss:$16 sps:$4 sm:$0xff]  }
  0x1d   :  { %v3231_v22 = vld [vmem:[%s4718_s1 + $0x288] ss:$16 sps:$4 sm:$0xff]   ;;  %v3236_v23 = vld [vmem:[%s4718_s1 + $0x2a4] ss:$16 sps:$4 sm:$0xff]   ;;  %v3239_v24 = vld [vmem:[%s4718_s1 + $0x2ac] ss:$16 sps:$4 sm:$0xff]  }
  0x1e   :  { %v3234_v25 = vld [vmem:[%s4718_s1 + $0x2a0] ss:$16 sps:$4 sm:$0xff]   ;;  %v3237_v26 = vld [vmem:[%s4718_s1 + $0x2a8] ss:$16 sps:$4 sm:$0xff]   ;;  %v3242_v27 = vld [vmem:[%s4718_s1 + $0x2c4] ss:$16 sps:$4 sm:$0xff]  }
  0x1f   :  { %1616 = vmatpush1.bf16.msra.mxu0 %v3152_v30  ;;  %1780 = vmatpush1.bf16.msra.mxu1 %v3153_v31  ;;  %v3245_v28 = vld [vmem:[%s4718_s1 + $0x2cc] ss:$16 sps:$4 sm:$0xff]   ;;  %v3240_v31 = vld [vmem:[%s4718_s1 + $0x2c0] ss:$16 sps:$4 sm:$0xff]   ;;  %v3267_v48 = vld [vmem:[%s4718_s1 + $0x348] ss:$16 sps:$4 sm:$0xff]  }
  0x20   :  { %1617 = vmatprep.subr.bf16.mxu0 %v3154_v32  ;;  %1781 = vmatprep.subr.bf16.mxu1 %v3156_v33  ;;  %v3941_v29 = vld [vmem:[%s4719_s0 + $0x8] sm:$0xff]  ;;  %v3248_v33 = vld [vmem:[%s4718_s1 + $0x2e4] ss:$16 sps:$4 sm:$0xff]   ;;  %vm2654_vm4 = vcmask 130112   ;;  %vm2673_vm5 = vcmask 195712   ;;  %vm2695_vm6 = vcmask 261312  }
  0x21   :  { %v2704_v30 = vcombine.high %v3941_v29, %v3941_v29  ;;  %v3243_v32 = vld [vmem:[%s4718_s1 + $0x2c8] ss:$16 sps:$4 sm:$0xff]   ;;  %v3269_v46 = vld [vmem:[%s4718_s1 + $0x34c] ss:$16 sps:$4 sm:$0xff]  }
  0x23   :  { %1618 = vmatpush1.bf16.msra.mxu0 %v3158_v34  ;;  %1782 = vmatpush1.bf16.msra.mxu1 %v3159_v35  ;;  %v3251_v34 = vld [vmem:[%s4718_s1 + $0x2ec] ss:$16 sps:$4 sm:$0xff]   ;;  %v3246_v35 = vld [vmem:[%s4718_s1 + $0x2e0] ss:$16 sps:$4 sm:$0xff]  }
  0x24   :  { %1619 = vmatprep.subr.bf16.mxu0 %v3160_v36  ;;  %1783 = vmatprep.subr.bf16.mxu1 %v3162_v37  ;;  %v3249_v36 = vld [vmem:[%s4718_s1 + $0x2e8] ss:$16 sps:$4 sm:$0xff]   ;;  %v3254_v37 = vld [vmem:[%s4718_s1 + $0x304] ss:$16 sps:$4 sm:$0xff]  }
  0x27   :  { %1620 = vmatpush1.bf16.msra.mxu0 %v3164_v38  ;;  %1784 = vmatpush1.bf16.msra.mxu1 %v3165_v39  ;;  %v3257_v38 = vld [vmem:[%s4718_s1 + $0x30c] ss:$16 sps:$4 sm:$0xff]   ;;  %v3252_v39 = vld [vmem:[%s4718_s1 + $0x300] ss:$16 sps:$4 sm:$0xff]  }
  0x28   :  { %1621 = vmatprep.subr.bf16.mxu0 %v3166_v40  ;;  %1785 = vmatprep.subr.bf16.mxu1 %v3168_v41  ;;  %v3255_v40 = vld [vmem:[%s4718_s1 + $0x308] ss:$16 sps:$4 sm:$0xff]   ;;  %v3260_v41 = vld [vmem:[%s4718_s1 + $0x324] ss:$16 sps:$4 sm:$0xff]  }
  0x2b   :  { %1622 = vmatpush1.bf16.msra.mxu0 %v3170_v42  ;;  %1786 = vmatpush1.bf16.msra.mxu1 %v3171_v43  ;;  %v3263_v42 = vld [vmem:[%s4718_s1 + $0x32c] ss:$16 sps:$4 sm:$0xff]   ;;  %v3258_v43 = vld [vmem:[%s4718_s1 + $0x320] ss:$16 sps:$4 sm:$0xff]  }
  0x2c   :  { %1623 = vmatprep.subr.bf16.mxu0 %v3172_v44  ;;  %1787 = vmatprep.subr.bf16.mxu1 %v3174_v45  ;;  %v3261_v44 = vld [vmem:[%s4718_s1 + $0x328] ss:$16 sps:$4 sm:$0xff]   ;;  %v3266_v45 = vld [vmem:[%s4718_s1 + $0x344] ss:$16 sps:$4 sm:$0xff]  }
  0x2f   :  { %1624 = vmatpush1.bf16.msra.mxu0 %v3176_v47  ;;  %1788 = vmatpush1.bf16.msra.mxu1 %v3177_v49  ;;  %v3264_v47 = vld [vmem:[%s4718_s1 + $0x340] ss:$16 sps:$4 sm:$0xff]   ;;  %v3272_v49 = vld [vmem:[%s4718_s1 + $0x364] ss:$16 sps:$4 sm:$0xff]  }
  0x30   :  { %1625 = vmatprep.subr.bf16.mxu0 %v3178_v50  ;;  %1789 = vmatprep.subr.bf16.mxu1 %v3180_v51  ;;  %v3275_v50 = vld [vmem:[%s4718_s1 + $0x36c] ss:$16 sps:$4 sm:$0xff]   ;;  %v3270_v51 = vld [vmem:[%s4718_s1 + $0x360] ss:$16 sps:$4 sm:$0xff]  }
  0x33   :  { %1626 = vmatpush1.bf16.msra.mxu0 %v3182_v52  ;;  %1790 = vmatpush1.bf16.msra.mxu1 %v3183_v53  ;;  %v3273_v52 = vld [vmem:[%s4718_s1 + $0x368] ss:$16 sps:$4 sm:$0xff]   ;;  %v3278_v53 = vld [vmem:[%s4718_s1 + $0x384] ss:$16 sps:$4 sm:$0xff]  }
  0x34   :  { %1627 = vmatprep.subr.bf16.mxu0 %v3184_v54  ;;  %1791 = vmatprep.subr.bf16.mxu1 %v3186_v55  ;;  %v3281_v54 = vld [vmem:[%s4718_s1 + $0x38c] ss:$16 sps:$4 sm:$0xff]   ;;  %v3276_v55 = vld [vmem:[%s4718_s1 + $0x380] ss:$16 sps:$4 sm:$0xff]  }
  0x37   :  { %1628 = vmatpush1.bf16.msra.mxu0 %v3188_v56  ;;  %1792 = vmatpush1.bf16.msra.mxu1 %v3189_v57  ;;  %v3279_v56 = vld [vmem:[%s4718_s1 + $0x388] ss:$16 sps:$4 sm:$0xff]   ;;  %v3284_v57 = vld [vmem:[%s4718_s1 + $0x3a4] ss:$16 sps:$4 sm:$0xff]  }
  0x38   :  { %1629 = vmatprep.subr.bf16.mxu0 %v3190_v58  ;;  %1793 = vmatprep.subr.bf16.mxu1 %v3192_v59  ;;  %v3287_v58 = vld [vmem:[%s4718_s1 + $0x3ac] ss:$16 sps:$4 sm:$0xff]   ;;  %v3282_v59 = vld [vmem:[%s4718_s1 + $0x3a0] ss:$16 sps:$4 sm:$0xff]  }
  0x3b   :  { %1630 = vmatpush1.bf16.msra.mxu0 %v3194_v60  ;;  %1794 = vmatpush1.bf16.msra.mxu1 %v3195_v61  ;;  %v3285_v60 = vld [vmem:[%s4718_s1 + $0x3a8] ss:$16 sps:$4 sm:$0xff]   ;;  %v3290_v61 = vld [vmem:[%s4718_s1 + $0x3c4] ss:$16 sps:$4 sm:$0xff]  }
  0x3c   :  { %1631 = vmatprep.subr.bf16.mxu0 %v3196_v62  ;;  %1795 = vmatprep.subr.bf16.mxu1 %v3198_v63  ;;  %v3293_v62 = vld [vmem:[%s4718_s1 + $0x3cc] ss:$16 sps:$4 sm:$0xff]   ;;  %v3288_v63 = vld [vmem:[%s4718_s1 + $0x3c0] ss:$16 sps:$4 sm:$0xff]  }
  0x3f   :  { %1632 = vmatpush1.bf16.msra.mxu0 %v3200_v0  ;;  %1796 = vmatpush1.bf16.msra.mxu1 %v3201_v1  ;;  %v3291_v0 = vld [vmem:[%s4718_s1 + $0x3c8] ss:$16 sps:$4 sm:$0xff]   ;;  %v3296_v1 = vld [vmem:[%s4718_s1 + $0x3e4] ss:$16 sps:$4 sm:$0xff]  }
  0x40   :  { %1642 = vmatprep.subr.bf16.mxu0 %v3206_v2  ;;  %1806 = vmatprep.subr.bf16.mxu1 %v3209_v3  ;;  %v3299_v2 = vld [vmem:[%s4718_s1 + $0x3ec] ss:$16 sps:$4 sm:$0xff]   ;;  %v3294_v3 = vld [vmem:[%s4718_s1 + $0x3e0] ss:$16 sps:$4 sm:$0xff]  }
  0x42   :  { %1634 = vmatmul.mubr.bf16.vlgmr.msra.gmra.mrb[0].mxu0 %v2701_v4  ;;  %1798 = vmatmul.mubr.bf16.vlgmr.msra.gmra.mrb[0].mxu1 %v2701_v4  ;;  %v3297_v4 = vld [vmem:[%s4718_s1 + $0x3e8] ss:$16 sps:$4 sm:$0xff]  }
  0x43   :  { %1643 = vmatpush1.bf16.msra.mxu0 %v3204_v5  ;;  %1807 = vmatpush1.bf16.msra.mxu1 %v3207_v6  ;;  %v3304_v5 = vld [vmem:[%s4718_s1 + $0x404] ss:$16 sps:$4 sm:$0xff]   ;;  %v3307_v6 = vld [vmem:[%s4718_s1 + $0x40c] ss:$16 sps:$4 sm:$0xff]  }
  0x44   :  { %1644 = vmatprep.subr.bf16.mxu0 %v3212_v7  ;;  %1808 = vmatprep.subr.bf16.mxu1 %v3215_v8  ;;  %v2703_v7 = vcombine.low %v3941_v29, %v3941_v29  ;;  %v3302_v8 = vld [vmem:[%s4718_s1 + $0x400] ss:$16 sps:$4 sm:$0xff]   ;;  %v3337_v29 = vld [vmem:[%s4718_s1 + $0x4ac] ss:$16 sps:$4 sm:$0xff]  }
  0x45   :  { %1674 = vmatprep.mubr.bf16.mxu0 %v2704_v30  ;;  %1838 = vmatprep.mubr.bf16.mxu1 %v2704_v30  ;;  %v3332_v30 = vld [vmem:[%s4718_s1 + $0x4a0] ss:$16 sps:$4 sm:$0xff]  }
  0x47   :  { %1645 = vmatpush1.bf16.msra.mxu0 %v3210_v9  ;;  %1809 = vmatpush1.bf16.msra.mxu1 %v3213_v10  ;;  %v3305_v9 = vld [vmem:[%s4718_s1 + $0x408] ss:$16 sps:$4 sm:$0xff]   ;;  %v3310_v10 = vld [vmem:[%s4718_s1 + $0x424] ss:$16 sps:$4 sm:$0xff]  }
  0x48   :  { %1646 = vmatprep.subr.bf16.mxu0 %v3218_v11  ;;  %1810 = vmatprep.subr.bf16.mxu1 %v3221_v12  ;;  %v4079_v11 = vld [vmem:[%s4719_s0 + $0x10] sm:$0xff]  ;;  %v3313_v12 = vld [vmem:[%s4718_s1 + $0x42c] ss:$16 sps:$4 sm:$0xff]  }
  0x4b   :  { %1647 = vmatpush1.bf16.msra.mxu0 %v3216_v13  ;;  %1811 = vmatpush1.bf16.msra.mxu1 %v3219_v14  ;;  %v2706_v13 = vcombine.high %v4079_v11, %v4079_v11  ;;  %v3308_v14 = vld [vmem:[%s4718_s1 + $0x420] ss:$16 sps:$4 sm:$0xff]  }
  0x4c   :  { %1648 = vmatprep.subr.bf16.mxu0 %v3224_v15  ;;  %1812 = vmatprep.subr.bf16.mxu1 %v3227_v16  ;;  %v3311_v15 = vld [vmem:[%s4718_s1 + $0x428] ss:$16 sps:$4 sm:$0xff]   ;;  %v3316_v16 = vld [vmem:[%s4718_s1 + $0x444] ss:$16 sps:$4 sm:$0xff]  }
  0x4f   :  { %1649 = vmatpush1.bf16.msra.mxu0 %v3222_v17  ;;  %1813 = vmatpush1.bf16.msra.mxu1 %v3225_v18  ;;  %v3319_v17 = vld [vmem:[%s4718_s1 + $0x44c] ss:$16 sps:$4 sm:$0xff]   ;;  %v3314_v18 = vld [vmem:[%s4718_s1 + $0x440] ss:$16 sps:$4 sm:$0xff]  }
  0x50   :  { %1650 = vmatprep.subr.bf16.mxu0 %v3230_v19  ;;  %1814 = vmatprep.subr.bf16.mxu1 %v3233_v20  ;;  %v3317_v19 = vld [vmem:[%s4718_s1 + $0x448] ss:$16 sps:$4 sm:$0xff]   ;;  %v3322_v20 = vld [vmem:[%s4718_s1 + $0x464] ss:$16 sps:$4 sm:$0xff]  }
  0x53   :  { %1651 = vmatpush1.bf16.msra.mxu0 %v3228_v21  ;;  %1815 = vmatpush1.bf16.msra.mxu1 %v3231_v22  ;;  %v3325_v21 = vld [vmem:[%s4718_s1 + $0x46c] ss:$16 sps:$4 sm:$0xff]   ;;  %v3320_v22 = vld [vmem:[%s4718_s1 + $0x460] ss:$16 sps:$4 sm:$0xff]  }
  0x54   :  { %1652 = vmatprep.subr.bf16.mxu0 %v3236_v23  ;;  %1816 = vmatprep.subr.bf16.mxu1 %v3239_v24  ;;  %v3323_v23 = vld [vmem:[%s4718_s1 + $0x468] ss:$16 sps:$4 sm:$0xff]   ;;  %v3328_v24 = vld [vmem:[%s4718_s1 + $0x484] ss:$16 sps:$4 sm:$0xff]  }
  0x57   :  { %1653 = vmatpush1.bf16.msra.mxu0 %v3234_v25  ;;  %1817 = vmatpush1.bf16.msra.mxu1 %v3237_v26  ;;  %v3331_v25 = vld [vmem:[%s4718_s1 + $0x48c] ss:$16 sps:$4 sm:$0xff]   ;;  %v3326_v26 = vld [vmem:[%s4718_s1 + $0x480] ss:$16 sps:$4 sm:$0xff]  }
  0x58   :  { %1654 = vmatprep.subr.bf16.mxu0 %v3242_v27  ;;  %1818 = vmatprep.subr.bf16.mxu1 %v3245_v28  ;;  %v3329_v27 = vld [vmem:[%s4718_s1 + $0x488] ss:$16 sps:$4 sm:$0xff]   ;;  %v3334_v28 = vld [vmem:[%s4718_s1 + $0x4a4] ss:$16 sps:$4 sm:$0xff]  }
  0x5b   :  { %1655 = vmatpush1.bf16.msra.mxu0 %v3240_v31  ;;  %1819 = vmatpush1.bf16.msra.mxu1 %v3243_v32  ;;  %v3335_v31 = vld [vmem:[%s4718_s1 + $0x4a8] ss:$16 sps:$4 sm:$0xff]   ;;  %v3340_v32 = vld [vmem:[%s4718_s1 + $0x4c4] ss:$16 sps:$4 sm:$0xff]  }
  0x5c   :  { %1656 = vmatprep.subr.bf16.mxu0 %v3248_v33  ;;  %1820 = vmatprep.subr.bf16.mxu1 %v3251_v34  ;;  %v3343_v33 = vld [vmem:[%s4718_s1 + $0x4cc] ss:$16 sps:$4 sm:$0xff]   ;;  %v3338_v34 = vld [vmem:[%s4718_s1 + $0x4c0] ss:$16 sps:$4 sm:$0xff]  }
  0x5f   :  { %1657 = vmatpush1.bf16.msra.mxu0 %v3246_v35  ;;  %1821 = vmatpush1.bf16.msra.mxu1 %v3249_v36  ;;  %v3341_v35 = vld [vmem:[%s4718_s1 + $0x4c8] ss:$16 sps:$4 sm:$0xff]   ;;  %v3346_v36 = vld [vmem:[%s4718_s1 + $0x4e4] ss:$16 sps:$4 sm:$0xff]  }
  0x60   :  { %1658 = vmatprep.subr.bf16.mxu0 %v3254_v37  ;;  %1822 = vmatprep.subr.bf16.mxu1 %v3257_v38  ;;  %v3349_v37 = vld [vmem:[%s4718_s1 + $0x4ec] ss:$16 sps:$4 sm:$0xff]   ;;  %v3344_v38 = vld [vmem:[%s4718_s1 + $0x4e0] ss:$16 sps:$4 sm:$0xff]  }
  0x63   :  { %1659 = vmatpush1.bf16.msra.mxu0 %v3252_v39  ;;  %1823 = vmatpush1.bf16.msra.mxu1 %v3255_v40  ;;  %v3347_v39 = vld [vmem:[%s4718_s1 + $0x4e8] ss:$16 sps:$4 sm:$0xff]   ;;  %v3352_v40 = vld [vmem:[%s4718_s1 + $0x504] ss:$16 sps:$4 sm:$0xff]  }
  0x64   :  { %1660 = vmatprep.subr.bf16.mxu0 %v3260_v41  ;;  %1824 = vmatprep.subr.bf16.mxu1 %v3263_v42  ;;  %v3355_v41 = vld [vmem:[%s4718_s1 + $0x50c] ss:$16 sps:$4 sm:$0xff]   ;;  %v3350_v42 = vld [vmem:[%s4718_s1 + $0x500] ss:$16 sps:$4 sm:$0xff]  }
  0x67   :  { %1661 = vmatpush1.bf16.msra.mxu0 %v3258_v43  ;;  %1825 = vmatpush1.bf16.msra.mxu1 %v3261_v44  ;;  %v3353_v43 = vld [vmem:[%s4718_s1 + $0x508] ss:$16 sps:$4 sm:$0xff]   ;;  %v3358_v44 = vld [vmem:[%s4718_s1 + $0x524] ss:$16 sps:$4 sm:$0xff]  }
  0x68   :  { %1662 = vmatprep.subr.bf16.mxu0 %v3266_v45  ;;  %1826 = vmatprep.subr.bf16.mxu1 %v3269_v46  ;;  %v3361_v45 = vld [vmem:[%s4718_s1 + $0x52c] ss:$16 sps:$4 sm:$0xff]   ;;  %v3356_v46 = vld [vmem:[%s4718_s1 + $0x520] ss:$16 sps:$4 sm:$0xff]  }
  0x6b   :  { %1663 = vmatpush1.bf16.msra.mxu0 %v3264_v47  ;;  %1827 = vmatpush1.bf16.msra.mxu1 %v3267_v48  ;;  %v3359_v47 = vld [vmem:[%s4718_s1 + $0x528] ss:$16 sps:$4 sm:$0xff]   ;;  %v3364_v48 = vld [vmem:[%s4718_s1 + $0x544] ss:$16 sps:$4 sm:$0xff]  }
  0x6c   :  { %1664 = vmatprep.subr.bf16.mxu0 %v3272_v49  ;;  %1828 = vmatprep.subr.bf16.mxu1 %v3275_v50  ;;  %v3367_v49 = vld [vmem:[%s4718_s1 + $0x54c] ss:$16 sps:$4 sm:$0xff]   ;;  %v3362_v50 = vld [vmem:[%s4718_s1 + $0x540] ss:$16 sps:$4 sm:$0xff]  }
  0x6f   :  { %1665 = vmatpush1.bf16.msra.mxu0 %v3270_v51  ;;  %1829 = vmatpush1.bf16.msra.mxu1 %v3273_v52  ;;  %v3365_v51 = vld [vmem:[%s4718_s1 + $0x548] ss:$16 sps:$4 sm:$0xff]   ;;  %v3370_v52 = vld [vmem:[%s4718_s1 + $0x564] ss:$16 sps:$4 sm:$0xff]  }
  0x70   :  { %1666 = vmatprep.subr.bf16.mxu0 %v3278_v53  ;;  %1830 = vmatprep.subr.bf16.mxu1 %v3281_v54  ;;  %v3373_v53 = vld [vmem:[%s4718_s1 + $0x56c] ss:$16 sps:$4 sm:$0xff]   ;;  %v3368_v54 = vld [vmem:[%s4718_s1 + $0x560] ss:$16 sps:$4 sm:$0xff]  }
  0x73   :  { %1667 = vmatpush1.bf16.msra.mxu0 %v3276_v55  ;;  %1831 = vmatpush1.bf16.msra.mxu1 %v3279_v56  ;;  %v3371_v55 = vld [vmem:[%s4718_s1 + $0x568] ss:$16 sps:$4 sm:$0xff]   ;;  %v3376_v56 = vld [vmem:[%s4718_s1 + $0x584] ss:$16 sps:$4 sm:$0xff]  }
  0x74   :  { %1668 = vmatprep.subr.bf16.mxu0 %v3284_v57  ;;  %1832 = vmatprep.subr.bf16.mxu1 %v3287_v58  ;;  %v3379_v57 = vld [vmem:[%s4718_s1 + $0x58c] ss:$16 sps:$4 sm:$0xff]   ;;  %v3374_v58 = vld [vmem:[%s4718_s1 + $0x580] ss:$16 sps:$4 sm:$0xff]  }
  0x77   :  { %1669 = vmatpush1.bf16.msra.mxu0 %v3282_v59  ;;  %1833 = vmatpush1.bf16.msra.mxu1 %v3285_v60  ;;  %v3377_v59 = vld [vmem:[%s4718_s1 + $0x588] ss:$16 sps:$4 sm:$0xff]   ;;  %v3382_v60 = vld [vmem:[%s4718_s1 + $0x5a4] ss:$16 sps:$4 sm:$0xff]  }
  0x78   :  { %1670 = vmatprep.subr.bf16.mxu0 %v3290_v61  ;;  %1834 = vmatprep.subr.bf16.mxu1 %v3293_v62  ;;  %v3385_v61 = vld [vmem:[%s4718_s1 + $0x5ac] ss:$16 sps:$4 sm:$0xff]   ;;  %v3380_v62 = vld [vmem:[%s4718_s1 + $0x5a0] ss:$16 sps:$4 sm:$0xff]  }
  0x7b   :  { %1671 = vmatpush1.bf16.msra.mxu0 %v3288_v63  ;;  %1835 = vmatpush1.bf16.msra.mxu1 %v3291_v0  ;;  %v3383_v63 = vld [vmem:[%s4718_s1 + $0x5a8] ss:$16 sps:$4 sm:$0xff]   ;;  %v3388_v0 = vld [vmem:[%s4718_s1 + $0x5c4] ss:$16 sps:$4 sm:$0xff]  }
  0x7c   :  { %1672 = vmatprep.subr.bf16.mxu0 %v3296_v1  ;;  %1836 = vmatprep.subr.bf16.mxu1 %v3299_v2  ;;  %v3391_v1 = vld [vmem:[%s4718_s1 + $0x5cc] ss:$16 sps:$4 sm:$0xff]   ;;  %v3386_v2 = vld [vmem:[%s4718_s1 + $0x5c0] ss:$16 sps:$4 sm:$0xff]  }
  0x7f   :  { %1673 = vmatpush1.bf16.msra.mxu0 %v3294_v3  ;;  %1837 = vmatpush1.bf16.msra.mxu1 %v3297_v4  ;;  %v3389_v3 = vld [vmem:[%s4718_s1 + $0x5c8] ss:$16 sps:$4 sm:$0xff]   ;;  %v3394_v4 = vld [vmem:[%s4718_s1 + $0x5e4] ss:$16 sps:$4 sm:$0xff]  }
  0x80   :  { %1683 = vmatprep.subr.bf16.mxu0 %v3304_v5  ;;  %1847 = vmatprep.subr.bf16.mxu1 %v3307_v6  ;;  %v3397_v5 = vld [vmem:[%s4718_s1 + $0x5ec] ss:$16 sps:$4 sm:$0xff]   ;;  %v3392_v6 = vld [vmem:[%s4718_s1 + $0x5e0] ss:$16 sps:$4 sm:$0xff]  }
  0x82   :  { %1675 = vmatmul.mubr.bf16.vlgmr.msra.gmra.mrb[0].mxu0 %v2703_v7  ;;  %1839 = vmatmul.mubr.bf16.vlgmr.msra.gmra.mrb[0].mxu1 %v2703_v7  ;;  %v3395_v7 = vld [vmem:[%s4718_s1 + $0x5e8] ss:$16 sps:$4 sm:$0xff]  }
  0x83   :  { %1684 = vmatpush1.bf16.msra.mxu0 %v3302_v8  ;;  %1848 = vmatpush1.bf16.msra.mxu1 %v3305_v9  ;;  %v3402_v8 = vld [vmem:[%s4718_s1 + $0x604] ss:$16 sps:$4 sm:$0xff]   ;;  %v3405_v9 = vld [vmem:[%s4718_s1 + $0x60c] ss:$16 sps:$4 sm:$0xff]  }
  0x84   :  { %1685 = vmatprep.subr.bf16.mxu0 %v3310_v10  ;;  %1849 = vmatprep.subr.bf16.mxu1 %v3313_v12  ;;  %v3400_v10 = vld [vmem:[%s4718_s1 + $0x600] ss:$16 sps:$4 sm:$0xff]   ;;  %v3403_v12 = vld [vmem:[%s4718_s1 + $0x608] ss:$16 sps:$4 sm:$0xff]  }
  0x85   :  { %1715 = vmatprep.mubr.bf16.mxu0 %v2706_v13  ;;  %1879 = vmatprep.mubr.bf16.mxu1 %v2706_v13  ;;  %v4275_v13 = vld [vmem:[%s4719_s0 + $0x18] sm:$0xff]  ;;  %s3609_s0 = smov 120  }
  0x87   :  { %1686 = vmatpush1.bf16.msra.mxu0 %v3308_v14  ;;  %1850 = vmatpush1.bf16.msra.mxu1 %v3311_v15  ;;  %v2705_v14 = vcombine.low %v4079_v11, %v4079_v11  ;;  %v3408_v15 = vld [vmem:[%s4718_s1 + $0x624] ss:$16 sps:$4 sm:$0xff]   ;;  %v3409_v11 = vld [vmem:[%s4718_s1 + $0x628] ss:$16 sps:$4 sm:$0xff]  }
  0x88   :  { %1687 = vmatprep.subr.bf16.mxu0 %v3316_v16  ;;  %1851 = vmatprep.subr.bf16.mxu1 %v3319_v17  ;;  %v3411_v16 = vld [vmem:[%s4718_s1 + $0x62c] ss:$16 sps:$4 sm:$0xff]   ;;  %v3406_v17 = vld [vmem:[%s4718_s1 + $0x620] ss:$16 sps:$4 sm:$0xff]  }
  0x8b   :  { %1688 = vmatpush1.bf16.msra.mxu0 %v3314_v18  ;;  %1852 = vmatpush1.bf16.msra.mxu1 %v3317_v19  ;;  %v2708_v18 = vcombine.high %v4275_v13, %v4275_v13  ;;  %v3414_v19 = vld [vmem:[%s4718_s1 + $0x644] ss:$16 sps:$4 sm:$0xff]  }
  0x8c   :  { %1689 = vmatprep.subr.bf16.mxu0 %v3322_v20  ;;  %1853 = vmatprep.subr.bf16.mxu1 %v3325_v21  ;;  %v3417_v20 = vld [vmem:[%s4718_s1 + $0x64c] ss:$16 sps:$4 sm:$0xff]   ;;  %v3412_v21 = vld [vmem:[%s4718_s1 + $0x640] ss:$16 sps:$4 sm:$0xff]  }
  0x8f   :  { %1690 = vmatpush1.bf16.msra.mxu0 %v3320_v22  ;;  %1854 = vmatpush1.bf16.msra.mxu1 %v3323_v23  ;;  %v3415_v22 = vld [vmem:[%s4718_s1 + $0x648] ss:$16 sps:$4 sm:$0xff]   ;;  %v3420_v23 = vld [vmem:[%s4718_s1 + $0x664] ss:$16 sps:$4 sm:$0xff]  }
  0x90   :  { %1691 = vmatprep.subr.bf16.mxu0 %v3328_v24  ;;  %1855 = vmatprep.subr.bf16.mxu1 %v3331_v25  ;;  %v3423_v24 = vld [vmem:[%s4718_s1 + $0x66c] ss:$16 sps:$4 sm:$0xff]   ;;  %v3418_v25 = vld [vmem:[%s4718_s1 + $0x660] ss:$16 sps:$4 sm:$0xff]  }
  0x93   :  { %1692 = vmatpush1.bf16.msra.mxu0 %v3326_v26  ;;  %1856 = vmatpush1.bf16.msra.mxu1 %v3329_v27  ;;  %v3421_v26 = vld [vmem:[%s4718_s1 + $0x668] ss:$16 sps:$4 sm:$0xff]   ;;  %v3426_v27 = vld [vmem:[%s4718_s1 + $0x684] ss:$16 sps:$4 sm:$0xff]  }
  0x94   :  { %1693 = vmatprep.subr.bf16.mxu0 %v3334_v28  ;;  %1857 = vmatprep.subr.bf16.mxu1 %v3337_v29  ;;  %v3429_v28 = vld [vmem:[%s4718_s1 + $0x68c] ss:$16 sps:$4 sm:$0xff]   ;;  %v3424_v29 = vld [vmem:[%s4718_s1 + $0x680] ss:$16 sps:$4 sm:$0xff]  }
  0x97   :  { %1694 = vmatpush1.bf16.msra.mxu0 %v3332_v30  ;;  %1858 = vmatpush1.bf16.msra.mxu1 %v3335_v31  ;;  %v3427_v30 = vld [vmem:[%s4718_s1 + $0x688] ss:$16 sps:$4 sm:$0xff]   ;;  %v3432_v31 = vld [vmem:[%s4718_s1 + $0x6a4] ss:$16 sps:$4 sm:$0xff]  }
  0x98   :  { %1695 = vmatprep.subr.bf16.mxu0 %v3340_v32  ;;  %1859 = vmatprep.subr.bf16.mxu1 %v3343_v33  ;;  %v3435_v32 = vld [vmem:[%s4718_s1 + $0x6ac] ss:$16 sps:$4 sm:$0xff]   ;;  %v3430_v33 = vld [vmem:[%s4718_s1 + $0x6a0] ss:$16 sps:$4 sm:$0xff]  }
  0x9b   :  { %1696 = vmatpush1.bf16.msra.mxu0 %v3338_v34  ;;  %1860 = vmatpush1.bf16.msra.mxu1 %v3341_v35  ;;  %v3433_v34 = vld [vmem:[%s4718_s1 + $0x6a8] ss:$16 sps:$4 sm:$0xff]   ;;  %v3438_v35 = vld [vmem:[%s4718_s1 + $0x6c4] ss:$16 sps:$4 sm:$0xff]  }
  0x9c   :  { %1697 = vmatprep.subr.bf16.mxu0 %v3346_v36  ;;  %1861 = vmatprep.subr.bf16.mxu1 %v3349_v37  ;;  %v3441_v36 = vld [vmem:[%s4718_s1 + $0x6cc] ss:$16 sps:$4 sm:$0xff]   ;;  %v3436_v37 = vld [vmem:[%s4718_s1 + $0x6c0] ss:$16 sps:$4 sm:$0xff]  }
  0x9f   :  { %1698 = vmatpush1.bf16.msra.mxu0 %v3344_v38  ;;  %1862 = vmatpush1.bf16.msra.mxu1 %v3347_v39  ;;  %v3439_v38 = vld [vmem:[%s4718_s1 + $0x6c8] ss:$16 sps:$4 sm:$0xff]   ;;  %v3444_v39 = vld [vmem:[%s4718_s1 + $0x6e4] ss:$16 sps:$4 sm:$0xff]  }
  0xa0   :  { %1699 = vmatprep.subr.bf16.mxu0 %v3352_v40  ;;  %1863 = vmatprep.subr.bf16.mxu1 %v3355_v41  ;;  %v3447_v40 = vld [vmem:[%s4718_s1 + $0x6ec] ss:$16 sps:$4 sm:$0xff]   ;;  %v3442_v41 = vld [vmem:[%s4718_s1 + $0x6e0] ss:$16 sps:$4 sm:$0xff]  }
  0xa3   :  { %1700 = vmatpush1.bf16.msra.mxu0 %v3350_v42  ;;  %1864 = vmatpush1.bf16.msra.mxu1 %v3353_v43  ;;  %v3445_v42 = vld [vmem:[%s4718_s1 + $0x6e8] ss:$16 sps:$4 sm:$0xff]   ;;  %v3450_v43 = vld [vmem:[%s4718_s1 + $0x704] ss:$16 sps:$4 sm:$0xff]  }
  0xa4   :  { %1701 = vmatprep.subr.bf16.mxu0 %v3358_v44  ;;  %1865 = vmatprep.subr.bf16.mxu1 %v3361_v45  ;;  %v3453_v44 = vld [vmem:[%s4718_s1 + $0x70c] ss:$16 sps:$4 sm:$0xff]   ;;  %v3448_v45 = vld [vmem:[%s4718_s1 + $0x700] ss:$16 sps:$4 sm:$0xff]  }
  0xa7   :  { %1702 = vmatpush1.bf16.msra.mxu0 %v3356_v46  ;;  %1866 = vmatpush1.bf16.msra.mxu1 %v3359_v47  ;;  %v3451_v46 = vld [vmem:[%s4718_s1 + $0x708] ss:$16 sps:$4 sm:$0xff]   ;;  %v3456_v47 = vld [vmem:[%s4718_s1 + $0x724] ss:$16 sps:$4 sm:$0xff]  }
  0xa8   :  { %1703 = vmatprep.subr.bf16.mxu0 %v3364_v48  ;;  %1867 = vmatprep.subr.bf16.mxu1 %v3367_v49  ;;  %v3459_v48 = vld [vmem:[%s4718_s1 + $0x72c] ss:$16 sps:$4 sm:$0xff]   ;;  %v3454_v49 = vld [vmem:[%s4718_s1 + $0x720] ss:$16 sps:$4 sm:$0xff]  }
  0xab   :  { %1704 = vmatpush1.bf16.msra.mxu0 %v3362_v50  ;;  %1868 = vmatpush1.bf16.msra.mxu1 %v3365_v51  ;;  %v3457_v50 = vld [vmem:[%s4718_s1 + $0x728] ss:$16 sps:$4 sm:$0xff]   ;;  %v3462_v51 = vld [vmem:[%s4718_s1 + $0x744] ss:$16 sps:$4 sm:$0xff]  }
  0xac   :  { %1705 = vmatprep.subr.bf16.mxu0 %v3370_v52  ;;  %1869 = vmatprep.subr.bf16.mxu1 %v3373_v53  ;;  %v3465_v52 = vld [vmem:[%s4718_s1 + $0x74c] ss:$16 sps:$4 sm:$0xff]   ;;  %v3460_v53 = vld [vmem:[%s4718_s1 + $0x740] ss:$16 sps:$4 sm:$0xff]  }
  0xaf   :  { %1706 = vmatpush1.bf16.msra.mxu0 %v3368_v54  ;;  %1870 = vmatpush1.bf16.msra.mxu1 %v3371_v55  ;;  %v3463_v54 = vld [vmem:[%s4718_s1 + $0x748] ss:$16 sps:$4 sm:$0xff]   ;;  %v3468_v55 = vld [vmem:[%s4718_s1 + $0x764] ss:$16 sps:$4 sm:$0xff]  }
  0xb0   :  { %1707 = vmatprep.subr.bf16.mxu0 %v3376_v56  ;;  %1871 = vmatprep.subr.bf16.mxu1 %v3379_v57  ;;  %v3471_v56 = vld [vmem:[%s4718_s1 + $0x76c] ss:$16 sps:$4 sm:$0xff]   ;;  %v3466_v57 = vld [vmem:[%s4718_s1 + $0x760] ss:$16 sps:$4 sm:$0xff]  }
  0xb3   :  { %1708 = vmatpush1.bf16.msra.mxu0 %v3374_v58  ;;  %1872 = vmatpush1.bf16.msra.mxu1 %v3377_v59  ;;  %v3469_v58 = vld [vmem:[%s4718_s1 + $0x768] ss:$16 sps:$4 sm:$0xff]   ;;  %v3474_v59 = vld [vmem:[%s4718_s1 + $0x784] ss:$16 sps:$4 sm:$0xff]  }
  0xb4   :  { %1709 = vmatprep.subr.bf16.mxu0 %v3382_v60  ;;  %1873 = vmatprep.subr.bf16.mxu1 %v3385_v61  ;;  %v3477_v60 = vld [vmem:[%s4718_s1 + $0x78c] ss:$16 sps:$4 sm:$0xff]   ;;  %v3472_v61 = vld [vmem:[%s4718_s1 + $0x780] ss:$16 sps:$4 sm:$0xff]  }
  0xb7   :  { %1710 = vmatpush1.bf16.msra.mxu0 %v3380_v62  ;;  %1874 = vmatpush1.bf16.msra.mxu1 %v3383_v63  ;;  %v3475_v62 = vld [vmem:[%s4718_s1 + $0x788] ss:$16 sps:$4 sm:$0xff]   ;;  %v3480_v63 = vld [vmem:[%s4718_s1 + $0x7a4] ss:$16 sps:$4 sm:$0xff]  }
  0xb8   :  { %1711 = vmatprep.subr.bf16.mxu0 %v3388_v0  ;;  %1875 = vmatprep.subr.bf16.mxu1 %v3391_v1  ;;  %v3483_v0 = vld [vmem:[%s4718_s1 + $0x7ac] ss:$16 sps:$4 sm:$0xff]   ;;  %v3478_v1 = vld [vmem:[%s4718_s1 + $0x7a0] ss:$16 sps:$4 sm:$0xff]  }
  0xbb   :  { %1712 = vmatpush1.bf16.msra.mxu0 %v3386_v2  ;;  %1876 = vmatpush1.bf16.msra.mxu1 %v3389_v3  ;;  %v3481_v2 = vld [vmem:[%s4718_s1 + $0x7a8] ss:$16 sps:$4 sm:$0xff]   ;;  %v3486_v3 = vld [vmem:[%s4718_s1 + $0x7c4] ss:$16 sps:$4 sm:$0xff]  }
  0xbc   :  { %1713 = vmatprep.subr.bf16.mxu0 %v3394_v4  ;;  %1877 = vmatprep.subr.bf16.mxu1 %v3397_v5  ;;  %v3489_v4 = vld [vmem:[%s4718_s1 + $0x7cc] ss:$16 sps:$4 sm:$0xff]   ;;  %v3484_v5 = vld [vmem:[%s4718_s1 + $0x7c0] ss:$16 sps:$4 sm:$0xff]  }
  0xbf   :  { %1714 = vmatpush1.bf16.msra.mxu0 %v3392_v6  ;;  %1878 = vmatpush1.bf16.msra.mxu1 %v3395_v7  ;;  %v3487_v6 = vld [vmem:[%s4718_s1 + $0x7c8] ss:$16 sps:$4 sm:$0xff]   ;;  %v3492_v7 = vld [vmem:[%s4718_s1 + $0x7e4] ss:$16 sps:$4 sm:$0xff]  }
  0xc0   :  { %1724 = vmatprep.subr.bf16.mxu0 %v3402_v8  ;;  %1888 = vmatprep.subr.bf16.mxu1 %v3405_v9  ;;  %v3495_v8 = vld [vmem:[%s4718_s1 + $0x7ec] ss:$16 sps:$4 sm:$0xff]   ;;  %v3490_v9 = vld [vmem:[%s4718_s1 + $0x7e0] ss:$16 sps:$4 sm:$0xff]  }
  0xc2   :  { %1716 = vmatmul.mubr.bf16.vlgmr.msra.gmra.mrb[0].mxu0 %v2705_v14  ;;  %1880 = vmatmul.mubr.bf16.vlgmr.msra.gmra.mrb[0].mxu1 %v2705_v14  ;;  %v2707_v14 = vcombine.low %v4275_v13, %v4275_v13  ;;  %v3506_v13 = vld [vmem:[%s4720_s3 + $0x24] ss:$8 sps:$4 sm:$0xff]  }
  0xc3   :  { %1725 = vmatpush1.bf16.msra.mxu0 %v3400_v10  ;;  %1889 = vmatpush1.bf16.msra.mxu1 %v3403_v12  ;;  %v3493_v10 = vld [vmem:[%s4718_s1 + $0x7e8] ss:$16 sps:$4 sm:$0xff]   ;;  %v3500_v12 = vld [vmem:[%s4720_s3 + $0x4] ss:$8 sps:$4 sm:$0xff]  }
  0xc4   :  { %1726 = vmatprep.subr.bf16.mxu0 %v3408_v15  ;;  %1890 = vmatprep.subr.bf16.mxu1 %v3411_v16  ;;  %v3498_v15 = vld [vmem:[%s4720_s3] ss:$8 sps:$4 sm:$0xff]   ;;  %v3503_v16 = vld [vmem:[%s4720_s3 + $0x14] ss:$8 sps:$4 sm:$0xff]  }
  0xc5   :  { %1756 = vmatprep.mubr.bf16.mxu0 %v2708_v18  ;;  %1920 = vmatprep.mubr.bf16.mxu1 %v2708_v18  ;;  %v3509_v18 = vld [vmem:[%s4720_s3 + $0x34] ss:$8 sps:$4 sm:$0xff]  }
  0xc7   :  { %1727 = vmatpush1.bf16.msra.mxu0 %v3406_v17  ;;  %1891 = vmatpush1.bf16.msra.mxu1 %v3409_v11  ;;  %v3501_v17 = vld [vmem:[%s4720_s3 + $0x10] ss:$8 sps:$4 sm:$0xff]   ;;  %v3504_v11 = vld [vmem:[%s4720_s3 + $0x20] ss:$8 sps:$4 sm:$0xff]  }
  0xc8   :  { %1728 = vmatprep.subr.bf16.mxu0 %v3414_v19  ;;  %1892 = vmatprep.subr.bf16.mxu1 %v3417_v20  ;;  %v3507_v19 = vld [vmem:[%s4720_s3 + $0x30] ss:$8 sps:$4 sm:$0xff]   ;;  %v3512_v20 = vld [vmem:[%s4720_s3 + $0x44] ss:$8 sps:$4 sm:$0xff]  }
  0xcb   :  { %1729 = vmatpush1.bf16.msra.mxu0 %v3412_v21  ;;  %1893 = vmatpush1.bf16.msra.mxu1 %v3415_v22  ;;  %v3510_v21 = vld [vmem:[%s4720_s3 + $0x40] ss:$8 sps:$4 sm:$0xff]   ;;  %v3515_v22 = vld [vmem:[%s4720_s3 + $0x54] ss:$8 sps:$4 sm:$0xff]  }
  0xcc   :  { %1730 = vmatprep.subr.bf16.mxu0 %v3420_v23  ;;  %1894 = vmatprep.subr.bf16.mxu1 %v3423_v24  ;;  %v3513_v23 = vld [vmem:[%s4720_s3 + $0x50] ss:$8 sps:$4 sm:$0xff]   ;;  %v3518_v24 = vld [vmem:[%s4720_s3 + $0x64] ss:$8 sps:$4 sm:$0xff]  }
  0xcf   :  { %1731 = vmatpush1.bf16.msra.mxu0 %v3418_v25  ;;  %1895 = vmatpush1.bf16.msra.mxu1 %v3421_v26  ;;  %v3516_v25 = vld [vmem:[%s4720_s3 + $0x60] ss:$8 sps:$4 sm:$0xff]   ;;  %v3521_v26 = vld [vmem:[%s4720_s3 + $0x74] ss:$8 sps:$4 sm:$0xff]  }
  0xd0   :  { %1732 = vmatprep.subr.bf16.mxu0 %v3426_v27  ;;  %1896 = vmatprep.subr.bf16.mxu1 %v3429_v28  ;;  %v3519_v27 = vld [vmem:[%s4720_s3 + $0x70] ss:$8 sps:$4 sm:$0xff]   ;;  %v3524_v28 = vld [vmem:[%s4720_s3 + $0x84] ss:$8 sps:$4 sm:$0xff]  }
  0xd3   :  { %1733 = vmatpush1.bf16.msra.mxu0 %v3424_v29  ;;  %1897 = vmatpush1.bf16.msra.mxu1 %v3427_v30  ;;  %v3522_v29 = vld [vmem:[%s4720_s3 + $0x80] ss:$8 sps:$4 sm:$0xff]   ;;  %v3527_v30 = vld [vmem:[%s4720_s3 + $0x94] ss:$8 sps:$4 sm:$0xff]  }
  0xd4   :  { %1734 = vmatprep.subr.bf16.mxu0 %v3432_v31  ;;  %1898 = vmatprep.subr.bf16.mxu1 %v3435_v32  ;;  %v3525_v31 = vld [vmem:[%s4720_s3 + $0x90] ss:$8 sps:$4 sm:$0xff]   ;;  %v3530_v32 = vld [vmem:[%s4720_s3 + $0xa4] ss:$8 sps:$4 sm:$0xff]  }
  0xd7   :  { %1735 = vmatpush1.bf16.msra.mxu0 %v3430_v33  ;;  %1899 = vmatpush1.bf16.msra.mxu1 %v3433_v34  ;;  %v3528_v33 = vld [vmem:[%s4720_s3 + $0xa0] ss:$8 sps:$4 sm:$0xff]   ;;  %v3533_v34 = vld [vmem:[%s4720_s3 + $0xb4] ss:$8 sps:$4 sm:$0xff]  }
  0xd8   :  { %1736 = vmatprep.subr.bf16.mxu0 %v3438_v35  ;;  %1900 = vmatprep.subr.bf16.mxu1 %v3441_v36  ;;  %v3531_v35 = vld [vmem:[%s4720_s3 + $0xb0] ss:$8 sps:$4 sm:$0xff]   ;;  %v3536_v36 = vld [vmem:[%s4720_s3 + $0xc4] ss:$8 sps:$4 sm:$0xff]  }
  0xdb   :  { %1737 = vmatpush1.bf16.msra.mxu0 %v3436_v37  ;;  %1901 = vmatpush1.bf16.msra.mxu1 %v3439_v38  ;;  %v3534_v37 = vld [vmem:[%s4720_s3 + $0xc0] ss:$8 sps:$4 sm:$0xff]   ;;  %v3539_v38 = vld [vmem:[%s4720_s3 + $0xd4] ss:$8 sps:$4 sm:$0xff]  }
  0xdc   :  { %1738 = vmatprep.subr.bf16.mxu0 %v3444_v39  ;;  %1902 = vmatprep.subr.bf16.mxu1 %v3447_v40  ;;  %v3537_v39 = vld [vmem:[%s4720_s3 + $0xd0] ss:$8 sps:$4 sm:$0xff]   ;;  %v3542_v40 = vld [vmem:[%s4720_s3 + $0xe4] ss:$8 sps:$4 sm:$0xff]  }
  0xdf   :  { %1739 = vmatpush1.bf16.msra.mxu0 %v3442_v41  ;;  %1903 = vmatpush1.bf16.msra.mxu1 %v3445_v42  ;;  %v3540_v41 = vld [vmem:[%s4720_s3 + $0xe0] ss:$8 sps:$4 sm:$0xff]   ;;  %v3545_v42 = vld [vmem:[%s4720_s3 + $0xf4] ss:$8 sps:$4 sm:$0xff]  }
  0xe0   :  { %1740 = vmatprep.subr.bf16.mxu0 %v3450_v43  ;;  %1904 = vmatprep.subr.bf16.mxu1 %v3453_v44  ;;  %v3543_v43 = vld [vmem:[%s4720_s3 + $0xf0] ss:$8 sps:$4 sm:$0xff]   ;;  %v3548_v44 = vld [vmem:[%s4720_s3 + $0x104] ss:$8 sps:$4 sm:$0xff]  }
  0xe3   :  { %1741 = vmatpush1.bf16.msra.mxu0 %v3448_v45  ;;  %1905 = vmatpush1.bf16.msra.mxu1 %v3451_v46  ;;  %v3605_v45 = vmov 0   ;;  %v3572_v46 = vld [vmem:[%s4721_s5] sm:$0xff]  }
  0xe4   :  { %1742 = vmatprep.subr.bf16.mxu0 %v3456_v47  ;;  %1906 = vmatprep.subr.bf16.mxu1 %v3459_v48  ;;  %v3573_v47 = vld [vmem:[%s4721_s5 + $0x8] sm:$0xff]   ;;  %v3574_v48 = vld [vmem:[%s4721_s5 + $0x10] sm:$0xff]  }
  0xe7   :  { %1743 = vmatpush1.bf16.msra.mxu0 %v3454_v49  ;;  %1907 = vmatpush1.bf16.msra.mxu1 %v3457_v50  ;;  %v3575_v49 = vld [vmem:[%s4721_s5 + $0x18] sm:$0xff]   ;;  %v3576_v50 = vld [vmem:[%s4721_s5 + $0x20] sm:$0xff]  }
  0xe8   :  { %1744 = vmatprep.subr.bf16.mxu0 %v3462_v51  ;;  %1908 = vmatprep.subr.bf16.mxu1 %v3465_v52  ;;  %v3577_v51 = vld [vmem:[%s4721_s5 + $0x28] sm:$0xff]   ;;  %v3578_v52 = vld [vmem:[%s4721_s5 + $0x30] sm:$0xff]  }
  0xeb   :  { %1745 = vmatpush1.bf16.msra.mxu0 %v3460_v53  ;;  %1909 = vmatpush1.bf16.msra.mxu1 %v3463_v54  ;;  %v1935_v53 = vlaneseq }
  0xec   :  { %1746 = vmatprep.subr.bf16.mxu0 %v3468_v55  ;;  %1910 = vmatprep.subr.bf16.mxu1 %v3471_v56  ;;  %v1933_v56 = vld [vmem:[%s4722_s2] sm:$0xf] }
  0xed   :  { %v4591_v54 = vshrl.u32 %v1935_v53, 7 }
  0xef   :  { %1747 = vmatpush1.bf16.msra.mxu0 %v3466_v57  ;;  %1911 = vmatpush1.bf16.msra.mxu1 %v3469_v58  ;;  %v1937_v55 = vsub.s32 0, %v4591_v54  ;;  %v1941_v57 = vsub.s32 1, %v4591_v54  ;;  %v1949_v58 = vsub.s32 3, %v4591_v54 }
  0xf0   :  { %1748 = vmatprep.subr.bf16.mxu0 %v3474_v59  ;;  %1912 = vmatprep.subr.bf16.mxu1 %v3477_v60 }
  0xf1   :  { %v1938_v59 = vrot.slane %v1933_v56, %v1937_v55 }
  0xf3   :  { %1749 = vmatpush1.bf16.msra.mxu0 %v3472_v61  ;;  %1913 = vmatpush1.bf16.msra.mxu1 %v3475_v62  ;;  %v1942_v62 = vrot.slane %v1933_v56, %v1941_v57 }
  0xf4   :  { %1750 = vmatprep.subr.bf16.mxu0 %v3480_v63  ;;  %1914 = vmatprep.subr.bf16.mxu1 %v3483_v0  ;;  %v1950_v63 = vrot.slane %v1933_v56, %v1949_v58 }
  0xf7   :  { %1751 = vmatpush1.bf16.msra.mxu0 %v3478_v1  ;;  %1915 = vmatpush1.bf16.msra.mxu1 %v3481_v2 }
  0xf8   :  { %1752 = vmatprep.subr.bf16.mxu0 %v3486_v3  ;;  %1916 = vmatprep.subr.bf16.mxu1 %v3489_v4 }
  0xfb   :  { %1753 = vmatpush1.bf16.msra.mxu0 %v3484_v5  ;;  %1917 = vmatpush1.bf16.msra.mxu1 %v3487_v6 }
  0xfc   :  { %1754 = vmatprep.subr.bf16.mxu0 %v3492_v7  ;;  %1918 = vmatprep.subr.bf16.mxu1 %v3495_v8 }
  0xff   :  { %1755 = vmatpush1.bf16.msra.mxu0 %v3490_v9  ;;  %1919 = vmatpush1.bf16.msra.mxu1 %v3493_v10 }
 0x100   :  { %2284 = vmatprep.subr.bf16.mxu0 %v3500_v12  ;;  %2453 = vmatprep.subr.bf16.mxu1 %v3605_v45 }
 0x102   :  { %1757 = vmatmul.mubr.bf16.vlgmr.msra.gmra.mrb[0].mxu0 %v2707_v14  ;;  %1921 = vmatmul.mubr.bf16.vlgmr.msra.gmra.mrb[0].mxu1 %v2707_v14 }
 0x103   :  { %2285 = vmatpush1.bf16.msra.mxu0 %v3498_v15  ;;  %2454 = vmatpush1.bf16.msra.mxu1 %v3572_v46  ;;  %v3606_v46 = vmov 0.0  }
 0x104   :  { %2286 = vmatprep.subr.bf16.mxu0 %v3503_v16  ;;  %2455 = vmatprep.subr.bf16.mxu1 %v3605_v45 }
 0x107   :  { %2287 = vmatpush1.bf16.msra.mxu0 %v3501_v17  ;;  %2456 = vmatpush1.bf16.msra.mxu1 %v3573_v47  ;;  %v2016_v47 = vld [vmem:[%s4724_s4] sm:$0x3] }
 0x108   :  { %2288 = vmatprep.subr.bf16.mxu0 %v3506_v13  ;;  %2457 = vmatprep.subr.bf16.mxu1 %v3605_v45  ;;  %v3546_v13 = vld [vmem:[%s4720_s3 + $0x100] ss:$8 sps:$4 sm:$0xff]  }
 0x10b   :  { %2289 = vmatpush1.bf16.msra.mxu0 %v3504_v11  ;;  %2458 = vmatpush1.bf16.msra.mxu1 %v3574_v48  ;;  %v2021_v48 = vrot.slane %v2016_v47, %v1937_v55  ;;  %v3583_v55 = vld [vmem:[%s4723_s7 + $0x10] sm:$0xff]  }
 0x10c   :  { %2290 = vmatprep.subr.bf16.mxu0 %v3509_v18  ;;  %2459 = vmatprep.subr.bf16.mxu1 %v3605_v45  ;;  %v3551_v18 = vld [vmem:[%s4720_s3 + $0x114] ss:$8 sps:$4 sm:$0xff]  }
 0x10f   :  { %2291 = vmatpush1.bf16.msra.mxu0 %v3507_v19  ;;  %2460 = vmatpush1.bf16.msra.mxu1 %v3575_v49  ;;  %v2025_v49 = vrot.slane %v2016_v47, %v1941_v57  ;;  %v3584_v57 = vld [vmem:[%s4723_s7 + $0x18] sm:$0xff]  }
 0x110   :  { %2292 = vmatprep.subr.bf16.mxu0 %v3512_v20  ;;  %2461 = vmatprep.subr.bf16.mxu1 %v3605_v45  ;;  %v3549_v20 = vld [vmem:[%s4720_s3 + $0x110] ss:$8 sps:$4 sm:$0xff]  }
 0x113   :  { %2293 = vmatpush1.bf16.msra.mxu0 %v3510_v21  ;;  %2462 = vmatpush1.bf16.msra.mxu1 %v3576_v50  ;;  %v3554_v21 = vld [vmem:[%s4720_s3 + $0x124] ss:$8 sps:$4 sm:$0xff]  }
 0x114   :  { %2294 = vmatprep.subr.bf16.mxu0 %v3515_v22  ;;  %2463 = vmatprep.subr.bf16.mxu1 %v3605_v45  ;;  %v3552_v22 = vld [vmem:[%s4720_s3 + $0x120] ss:$8 sps:$4 sm:$0xff]  }
 0x117   :  { %2295 = vmatpush1.bf16.msra.mxu0 %v3513_v23  ;;  %2464 = vmatpush1.bf16.msra.mxu1 %v3577_v51  ;;  %v3557_v23 = vld [vmem:[%s4720_s3 + $0x134] ss:$8 sps:$4 sm:$0xff]  }
 0x118   :  { %2296 = vmatprep.subr.bf16.mxu0 %v3518_v24  ;;  %2465 = vmatprep.subr.bf16.mxu1 %v3605_v45  ;;  %v3555_v24 = vld [vmem:[%s4720_s3 + $0x130] ss:$8 sps:$4 sm:$0xff]  }
 0x11b   :  { %2297 = vmatpush1.bf16.msra.mxu0 %v3516_v25  ;;  %2466 = vmatpush1.bf16.msra.mxu1 %v3578_v52  ;;  %v3560_v25 = vld [vmem:[%s4720_s3 + $0x144] ss:$8 sps:$4 sm:$0xff]  }
 0x11c   :  { %2298 = vmatprep.subr.bf16.mxu0 %v3521_v26  ;;  %2467 = vmatprep.subr.bf16.mxu1 %v3605_v45  ;;  %v3558_v26 = vld [vmem:[%s4720_s3 + $0x140] ss:$8 sps:$4 sm:$0xff]  }
 0x11f   :  { %2299 = vmatpush1.bf16.msra.mxu0 %v3519_v27  ;;  %v3563_v27 = vld [vmem:[%s4720_s3 + $0x154] ss:$8 sps:$4 sm:$0xff]  }
 0x120   :  { %2300 = vmatprep.subr.bf16.mxu0 %v3524_v28  ;;  %v3561_v28 = vld [vmem:[%s4720_s3 + $0x150] ss:$8 sps:$4 sm:$0xff]  }
 0x123   :  { %2301 = vmatpush1.bf16.msra.mxu0 %v3522_v29  ;;  %v1945_v29 = vsub.s32 2, %v4591_v54  ;;  %v3582_v54 = vld [vmem:[%s4723_s7 + $0x8] sm:$0xff]  }
 0x124   :  { %2302 = vmatprep.subr.bf16.mxu0 %v3527_v30  ;;  %v3566_v30 = vld [vmem:[%s4720_s3 + $0x164] ss:$8 sps:$4 sm:$0xff]  }
 0x127   :  { %2303 = vmatpush1.bf16.msra.mxu0 %v3525_v31  ;;  %v3564_v31 = vld [vmem:[%s4720_s3 + $0x160] ss:$8 sps:$4 sm:$0xff]  }
 0x128   :  { %2304 = vmatprep.subr.bf16.mxu0 %v3530_v32 }
 0x12b   :  { %2305 = vmatpush1.bf16.msra.mxu0 %v3528_v33  ;;  %v1946_v33 = vrot.slane %v1933_v56, %v1945_v29 }
 0x12c   :  { %2306 = vmatprep.subr.bf16.mxu0 %v3533_v34  ;;  %v3569_v34 = vld [vmem:[%s4720_s3 + $0x174] ss:$8 sps:$4 sm:$0xff]  }
 0x12f   :  { %2307 = vmatpush1.bf16.msra.mxu0 %v3531_v35  ;;  %v2015_v35 = vld [vmem:[%s4720_s3 + $0x180] sm:$0xff] }
 0x130   :  { %2308 = vmatprep.subr.bf16.mxu0 %v3536_v36  ;;  %v3567_v36 = vld [vmem:[%s4720_s3 + $0x170] ss:$8 sps:$4 sm:$0xff]  }
 0x133   :  { %2309 = vmatpush1.bf16.msra.mxu0 %v3534_v37 }
 0x134   :  { %2310 = vmatprep.subr.bf16.mxu0 %v3539_v38  ;;  %v3014_v38 = vcombine.high %v2015_v35, %v2015_v35 }
 0x137   :  { %2311 = vmatpush1.bf16.msra.mxu0 %v3537_v39  ;;  %v3013_v39 = vcombine.low %v2015_v35, %v2015_v35 }
 0x138   :  { %2312 = vmatprep.subr.bf16.mxu0 %v3542_v40 }
 0x13b   :  { %2313 = vmatpush1.bf16.msra.mxu0 %v3540_v41  ;;  %v2279_v41 = vsel %vm2277_vm1, %v3013_v39, 0 }
 0x13c   :  { %2314 = vmatprep.subr.bf16.mxu0 %v3545_v42 }
 0x13f   :  { %2315 = vmatpush1.bf16.msra.mxu0 %v3543_v43  ;;  %v3579_v43 = vld [vmem:[%s4721_s5 + $0x38] sm:$0xff]  }
 0x140   :  { %2325 = vmatprep.subr.bf16.mxu0 %v3548_v44  ;;  %2468 = vmatpush1.bf16.msra.mxu1 %v3579_v43  ;;  %v3580_v44 = vld [vmem:[%s4721_s5 + $0x40] sm:$0xff]  }
 0x141   :  { %2469 = vmatprep.subr.bf16.mxu1 %v3605_v45 }
 0x144   :  { %2470 = vmatpush1.bf16.msra.mxu1 %v3580_v44 }
 0x145   :  { %3046 = vmatprep.subr.bf16.mxu1 %v3606_v46 }
 0x1d5   :  { %v1758_v60 = vpop.f32.mrb[0].mxu0  ;;  %v1922_v61 = vpop.f32.mrb[0].mxu1 }
 0x1d6   :  { %v1929_v0 = vmul.f32 0.003921569, %v1758_v60  ;;  %v1760_v1 = vpop.f32.mrb[1].mxu0  ;;  %v1924_v2 = vpop.f32.mrb[1].mxu1  ;;  %v1931_v32 = vmul.f32 0.003921569, %v1922_v61 }
 0x1d7   :  { %v1930_v3 = vmul.f32 0.003921569, %v1760_v1  ;;  %v1932_v4 = vmul.f32 0.003921569, %v1924_v2  ;;  %v1762_v5 = vpop.f32.mrb[2].mxu0  ;;  %v1926_v6 = vpop.f32.mrb[2].mxu1 }
 0x1d8   :  { %v1955_v7 = vadd.f32 %v1938_v59, %v1929_v0  ;;  %v1763_v8 = vpop.f32.mrb[3].mxu0  ;;  %v1927_v9 = vpop.f32.mrb[3].mxu1  ;;  %v1957_v37 = vadd.f32 %v1946_v33, %v1931_v32  ;;  %v3581_v61 = vld [vmem:[%s4723_s7] sm:$0xff]   ;;  %v3586_v0 = vld [vmem:[%s4723_s7 + $0x28] sm:$0xff]   ;;  %v3587_v1 = vld [vmem:[%s4723_s7 + $0x30] sm:$0xff]  }
 0x1d9   :  { %v1956_v10 = vadd.f32 %v1942_v62, %v1930_v3  ;;  %v1958_v12 = vadd.f32 %v1950_v63, %v1932_v4  ;;  %v3585_v63 = vld [vmem:[%s4723_s7 + $0x20] sm:$0xff]   ;;  %v3588_v2 = vld [vmem:[%s4723_s7 + $0x38] sm:$0xff]   ;;  %s3608_s7 = smov 104  }
 0x1da   :  { %v1959_v14 = vmax.f32 %v1955_v7, 0.0  ;;  %v1961_v40 = vmax.f32 %v1957_v37, 0.0  ;;  %v3017_v3 = vld [vmem:[%s4725_s6] ss:$0 sm:$0xff]  ;;  %s3610_s6 = smov 112  }
 0x1db   :  { %v1960_v15 = vmax.f32 %v1956_v10, 0.0  ;;  %v1962_v16 = vmax.f32 %v1958_v12, 0.0  ;;  %v3028_v12 = vld [vmem:[%s4726_s8] ss:$0 sm:$0xff]  ;;  %s3612_s8 = smov 8  }
 0x1dc   :  { %v1963_v11 = vpack.c.bf16 %v1959_v14, %v1959_v14  ;;  %v1965_v42 = vpack.c.bf16 %v1961_v40, %v1961_v40 }
 0x1dd   :  { %v1964_v17 = vpack.c.bf16 %v1960_v15, %v1960_v15  ;;  %v1966_v19 = vpack.c.bf16 %v1962_v16, %v1962_v16 }
 0x1df   :  { %2316 = vmatprep.mubr.bf16.mxu0 %v1964_v17 }
 0x1e0   :  { %2317 = vmatmul.mubr.bf16.vlgmr.msra.gmra.mrb[4].mxu0 %v1963_v11 }
 0x1e1   :  { %2326 = vmatpush1.bf16.msra.mxu0 %v3546_v13  ;;  %3016 = vmatprep.mubr.msk.bf16.mxu0 %vm2273_vm0, %v1966_v19 }
 0x1e2   :  { %2327 = vmatprep.subr.bf16.mxu0 %v3551_v18 }
 0x1e5   :  { %2328 = vmatpush1.bf16.msra.mxu0 %v3549_v20 }
 0x1e6   :  { %2329 = vmatprep.subr.bf16.mxu0 %v3554_v21 }
 0x1e9   :  { %2330 = vmatpush1.bf16.msra.mxu0 %v3552_v22 }
 0x1ea   :  { %2331 = vmatprep.subr.bf16.mxu0 %v3557_v23 }
 0x1ed   :  { %2332 = vmatpush1.bf16.msra.mxu0 %v3555_v24 }
 0x1ee   :  { %2333 = vmatprep.subr.bf16.mxu0 %v3560_v25 }
 0x1f1   :  { %2334 = vmatpush1.bf16.msra.mxu0 %v3558_v26 }
 0x1f2   :  { %2335 = vmatprep.subr.bf16.mxu0 %v3563_v27 }
 0x1f5   :  { %2336 = vmatpush1.bf16.msra.mxu0 %v3561_v28 }
 0x1f6   :  { %2337 = vmatprep.subr.bf16.mxu0 %v3566_v30 }
 0x1f9   :  { %2338 = vmatpush1.bf16.msra.mxu0 %v3564_v31 }
 0x1fa   :  { %2339 = vmatprep.subr.bf16.mxu0 %v3569_v34 }
 0x1fd   :  { %2340 = vmatpush1.bf16.msra.mxu0 %v3567_v36 }
 0x1fe   :  { %3015 = vmatprep.subr.msk.bf16.mxu0 %vm2277_vm1, %v3014_v38 }
 0x201   :  { %2342 = vmatpush1.bf16.msra.mxu0 %v2279_v41 }
 0x204   :  { %2358 = vmatmul.mubr.bf16.vlgmr.msra.gmra.mrb[4].mxu0 %v1965_v42 }
 0x2d7   :  { %v2359_v50 = vpop.f32.mrb[4].mxu0 }
 0x2d8   :  { %v3066_v51 = vadd.f32 %v2359_v50, %v2021_v48  ;;  %v2361_v45 = vpop.f32.mrb[5].mxu0 }
 0x2d9   :  { %v3067_v52 = vadd.f32 %v2361_v45, %v2025_v49  ;;  %v2363_v53 = vpop.f32.mrb[6].mxu0 }
 0x2da   :  { %v2366_v56 = vmax.f32 %v3066_v51, 0.0  ;;  %v2364_v58 = vpop.f32.mrb[7].mxu0 }
 0x2db   :  { %v2367_v59 = vmax.f32 %v3067_v52, 0.0 }
 0x2dc   :  { %v2368_v62 = vpack.c.bf16 %v2366_v56, %v2366_v56 }
 0x2dd   :  { %v2369_v60 = vpack.c.bf16 %v2367_v59, %v2367_v59 }
 0x2df   :  { %3027 = vmatprep.mubr.msk.bf16.mxu1 %vm2449_vm2, %v2369_v60 }
 0x2e0   :  { %2486 = vmatmul.mubr.bf16.vlgmr.msra.gmra.mrb[4].mxu1 %v2368_v62 }
 0x2e1   :  { %3047 = vmatpush3.bf16.msra.mxu1 %v3581_v61  ;;  %3062 = vmatprep.mubr.msk.bf16.mxu1 %vm3607_vm3, %v3606_v46 }
 0x2e2   :  { %3048 = vmatprep.subr.bf16.mxu1 %v3606_v46 }
 0x2e5   :  { %3049 = vmatpush3.bf16.msra.mxu1 %v3582_v54 }
 0x2e6   :  { %3050 = vmatprep.subr.bf16.mxu1 %v3606_v46 }
 0x2e9   :  { %3051 = vmatpush3.bf16.msra.mxu1 %v3583_v55 }
 0x2ea   :  { %3052 = vmatprep.subr.bf16.mxu1 %v3606_v46 }
 0x2ed   :  { %3053 = vmatpush3.bf16.msra.mxu1 %v3584_v57 }
 0x2ee   :  { %3054 = vmatprep.subr.bf16.mxu1 %v3606_v46 }
 0x2f1   :  { %3055 = vmatpush3.bf16.msra.mxu1 %v3585_v63 }
 0x2f2   :  { %3056 = vmatprep.subr.bf16.mxu1 %v3606_v46 }
 0x2f5   :  { %3057 = vmatpush3.bf16.msra.mxu1 %v3586_v0 }
 0x2f6   :  { %3058 = vmatprep.subr.bf16.mxu1 %v3606_v46 }
 0x2f9   :  { %3059 = vmatpush3.bf16.msra.mxu1 %v3587_v1 }
 0x2fa   :  { %3060 = vmatprep.subr.bf16.mxu1 %v3606_v46 }
 0x2fd   :  { %3061 = vmatpush3.bf16.msra.mxu1 %v3588_v2 }
 0x3b3   :  { %v2487_v4 = vpop.f32.mrb[4].mxu1 }
 0x3b4   :  { %v2488_v5 = vadd.f32 %v3017_v3, %v2487_v4  ;;  %v2489_v6 = vpop.f32.mrb[5].mxu1 }
 0x3b5   :  { %v2490_v7 = vpop.f32.mrb[6].mxu1 }
 0x3b6   :  { %v2493_v8 = vmax.f32 %v2488_v5, 0.0  ;;  %v2491_v9 = vpop.f32.mrb[7].mxu1 }
 0x3b8   :  { %v2494_v10 = vpack.c.bf16 %v2493_v8, %v2493_v8 }
 0x3ba   :  { %3063 = vmatmul.mubr.bf16.vlgmr.msra.gmra.mrb[8].mxu1 %v2494_v10 }
 0x48d   :  { %v2600_v14 = vpop.f32.mrb[8].mxu1 }
 0x48e   :  { %v2601_v15 = vadd.f32 %v3028_v12, %v2600_v14  ;;  %v3064_v16 = vpop.f32.mrb[9].mxu1 }
 0x48f   :  { %v2603_v17 = vpop.f32.mrb[10].mxu1 }
 0x490   :  { %2615 = vrot.lane.b32.xlu1 %v2601_v15, %s3608_s7  ;;  %2607 = vrot.lane.b32.xlu0 %v2601_v15, %s3609_s0  ;;  %v3065_v13 = vpop.f32.mrb[11].mxu1 }
 0x494   :  { %2611 = vrot.lane.b32.xlu0 %v2601_v15, %s3610_s6 }
 0x498   :  { %2675 = vrot.lane.b32.xlu0 %v2601_v15, %s3611_s16 }
 0x502   :  { %v2608_v11 = vpop.permute.xlu0 %2607  ;;  %v2616_v21 = vpop.permute.xlu1 %2615 }
 0x503   :  { %v2610_v18 = vadd.f32 %v2608_v11, %v2601_v15  ;;  %v2656_v25 = vadd.f32 %v2616_v21, %v2601_v15 }
 0x506   :  { %v2612_v19 = vpop.permute.xlu0 %2611 }
 0x507   :  { %v2614_v20 = vadd.f32 %v2612_v19, %v2610_v18  ;;  %v2637_v26 = vadd.f32 %v2612_v19, %v2601_v15 }
 0x509   :  { %v2618_v22 = vadd.f32 %v2616_v21, %v2614_v20 }
 0x50a   :  { %v2676_v24 = vpop.permute.xlu0 %2675 }
 0x50b   :  { %v2619_v23 = vmul.f32 0.25, %v2618_v22  ;;  %v2678_v28 = vadd.f32 %v2676_v24, %v2601_v15 }
 0x50d   :  { %2621 = vrot.lane.b32.xlu1 %v2619_v23, %s3609_s0 }
 0x57f   :  { %v2622_v27 = vpop.permute.xlu1 %2621 }
 0x580   :  { %v2657_v29 = vsub.f32 %v2656_v25, %v2622_v27  ;;  %v2638_v30 = vsub.f32 %v2637_v26, %v2622_v27  ;;  %v2624_v33 = vsub.f32 %v2610_v18, %v2622_v27  ;;  %v2679_v34 = vsub.f32 %v2678_v28, %v2622_v27 }
 0x582   :  { %v2658_v31 = vsel %vm2273_vm0, %v2657_v29, -inf  ;;  %v2639_v32 = vsel %vm2273_vm0, %v2638_v30, -inf  ;;  %v2625_v35 = vsel %vm2273_vm0, %v2624_v33, -inf  ;;  %v2680_v36 = vsel %vm2273_vm0, %v2679_v34, -inf }
 0x583   :  { %2659 = vmax.xlane.f32.xlu0 %v2658_v31  ;;  %2640 = vmax.xlane.f32.xlu1 %v2639_v32 }
 0x587   :  { %2626 = vmax.xlane.f32.xlu1 %v2625_v35  ;;  %2681 = vmax.xlane.f32.xlu0 %v2680_v36 }
 0x610   :  { %v2641_v37 = vpop.xlane.xlu1 %2640  ;;  %v2660_v38 = vpop.xlane.xlu0 %2659 }
 0x611   :  { %v2642_v39 = vsub.f32 %v2638_v30, %v2641_v37  ;;  %v2661_v40 = vsub.f32 %v2657_v29, %v2660_v38 }
 0x613   :  { %v2643_v41 = vmul.f32 1.442695, %v2642_v39  ;;  %v2662_v42 = vmul.f32 1.442695, %v2661_v40 }
 0x614   :  { %v2627_v43 = vpop.xlane.xlu1 %2626  ;;  %v2682_v44 = vpop.xlane.xlu0 %2681 }
 0x615   :  { %3589 = vpow2.f32 %v2643_v41  ;;  %v2628_v46 = vsub.f32 %v2624_v33, %v2627_v43  ;;  %v2683_v47 = vsub.f32 %v2679_v34, %v2682_v44 }
 0x616   :  { %3591 = vpow2.f32 %v2662_v42 }
 0x617   :  { %v2629_v48 = vmul.f32 1.442695, %v2628_v46  ;;  %v2684_v49 = vmul.f32 1.442695, %v2683_v47 }
 0x619   :  { %3593 = vpow2.f32 %v2629_v48 }
 0x61a   :  { %3595 = vpow2.f32 %v2684_v49 }
 0x61f   :  { %v3590_v50 = vpop.eup %3589 }
 0x620   :  { %v3592_v51 = vpop.eup %3591  ;;  %v2645_v45 = vsel %vm2273_vm0, %v3590_v50, 0.0 }
 0x621   :  { %2646 = vadd.xlane.f32.xlu0 %v2645_v45  ;;  %v2664_v52 = vsel %vm2273_vm0, %v3592_v51, 0.0 }
 0x622   :  { %2665 = vadd.xlane.f32.xlu1 %v2664_v52 }
 0x623   :  { %v3594_v53 = vpop.eup %3593 }
 0x624   :  { %v3596_v56 = vpop.eup %3595  ;;  %v2631_v58 = vsel %vm2273_vm0, %v3594_v53, 0.0 }
 0x625   :  { %v2686_v59 = vsel %vm2273_vm0, %v3596_v56, 0.0 }
 0x626   :  { %2632 = vadd.xlane.f32.xlu1 %v2631_v58  ;;  %2687 = vadd.xlane.f32.xlu0 %v2686_v59 }
 0x6ae   :  { %v2647_v60 = vpop.xlane.xlu0 %2646 }
 0x6af   :  { %v2666_v61 = vpop.xlane.xlu1 %2665  ;;  %3597 = vrcp.f32 %v2647_v60 }
 0x6b0   :  { %3599 = vrcp.f32 %v2666_v61 }
 0x6b3   :  { %v2633_v62 = vpop.xlane.xlu1 %2632  ;;  %v2688_v54 = vpop.xlane.xlu0 %2687 }
 0x6b4   :  { %3601 = vrcp.f32 %v2633_v62 }
 0x6b5   :  { %3603 = vrcp.f32 %v2688_v54 }
 0x6b9   :  { %v3598_v55 = vpop.eup %3597 }
 0x6ba   :  { %v3600_v57 = vpop.eup %3599  ;;  %v2649_v63 = vmul.f32 %v3598_v55, %v3590_v50 }
 0x6bb   :  { %v2668_v0 = vmul.f32 %v3600_v57, %v3592_v51 }
 0x6bc   :  { %2651 = vrot.lane.b32.xlu0 %v2649_v63, %s3612_s8 }
 0x6bd   :  { %2670 = vrot.lane.b32.xlu1 %v2668_v0, %s3613_s17 }
 0x6be   :  { %v3602_v1 = vpop.eup %3601 }
 0x6bf   :  { %v3604_v2 = vpop.eup %3603  ;;  %v2635_v3 = vmul.f32 %v3602_v1, %v3594_v53 }
 0x6c0   :  { %v2690_v4 = vmul.f32 %v3604_v2, %v3596_v56 }
 0x6c1   :  { %2636 = vst.msk [vmem:[%s4727_s9] sm:$0xff] %vm2273_vm0, %v2635_v3 }
 0x6c2   :  { %2692 = vrot.lane.b32.xlu1 %v2690_v4, %s3614_s19 }
 0x72e   :  { %v2652_v5 = vpop.permute.xlu0 %2651 }
 0x72f   :  { %v2671_v6 = vpop.permute.xlu1 %2670  ;;  %2655 = vst.msk [vmem:[%s4727_s9] sm:$0xff] %vm2654_vm4, %v2652_v5 }
 0x730   :  { %2674 = vst.msk [vmem:[%s4727_s9] sm:$0xff] %vm2673_vm5, %v2671_v6 }
 0x734   :  { %v2693_v7 = vpop.permute.xlu1 %2692 }
 0x735   :  { %2696 = vst.msk [vmem:[%s4727_s9] sm:$0xff] %vm2695_vm6, %v2693_v7 }

</bundles_post_ra>
